<compile_context>
chip_gen: v5e
topology: v5e:2x2
jax: 0.10.0
libtpu: 0.0.40
codegen_flags: <defaults>
</compile_context>

<pallas_src>
import functools

import jax
import jax.numpy as jnp
from jax.experimental import pallas as pl
from jax.experimental.pallas import tpu as pltpu

_VMEM = pl.BlockSpec(memory_space=pltpu.MemorySpace.VMEM)


def _round_up(n, m):
    return ((n + m - 1) // m) * m


def _fused_forward_kernel(*refs, n_layers, G, n_pad):
    """Whole forward pass, register-resident, lane-dense.

    Layout: activations are (C, n_pad) f32 with lane index n = b*G*G + i*G + j
    flattening (batch, padded-row, padded-col).  A spatial-S activation lives
    in the interior 1 <= i, j <= S; all other lanes (halo + lane padding) are
    kept exactly 0 via the precomputed interior masks.

    refs = (x,
            w0, b0, ..., w_{L-1}, b_{L-1},   # per-tap conv weights (9,F,Cin), bias (F,1)
            mask_0, ..., mask_L,             # (1, n_pad) interior masks, sizes S0..S0+L
            wfc, sel, bfc,                   # (F, n_pad), (n_pad, 128), (1, 128)
            out)                             # (1, 128)
    """
    x_ref = refs[0]
    conv_w = [refs[1 + 2 * i] for i in range(n_layers)]
    conv_b = [refs[2 + 2 * i] for i in range(n_layers)]
    mask_refs = [refs[1 + 2 * n_layers + i] for i in range(n_layers + 1)]
    base = 2 + 3 * n_layers
    wfc_ref, sel_ref, bfc_ref, out_ref = (refs[base], refs[base + 1],
                                          refs[base + 2], refs[base + 3])

    def shift(v, off):
        # shifted[n] = v[n + off]; roll wraparound only lands on border /
        # padding lanes that are always masked to zero before use.
        if off == 0:
            return v
        return pltpu.roll(v, shift=(-off) % n_pad, axis=1)

    a = x_ref[...]                                            # (Cin0, n_pad)

    for li in range(n_layers):
        # ---- conv3x3 'same': 9 accumulated MXU matmuls over rolled taps ----
        y = None
        for t in range(9):
            dy, dx = t // 3, t % 3
            tap = shift(a, (dy - 1) * G + (dx - 1))           # (cin, n_pad)
            c = jnp.dot(conv_w[li][t], tap,                   # (F,cin)@(cin,n_pad)
                        preferred_element_type=jnp.float32)
            y = c if y is None else y + c                     # (F, n_pad)
        # bias + ReLU, then zero everything outside the conv interior so the
        # pool's padding ring and the lane padding are exactly zero.
        y = jnp.maximum(y + conv_b[li][...], 0.0) * mask_refs[li][...]

        # ---- MaxPool2d(k=2, s=1, p=1): 3 lane rolls + elementwise max ----
        # (zero padding == -inf padding here because values are >= 0 post-ReLU)
        p = jnp.maximum(jnp.maximum(y, shift(y, -1)),
                        jnp.maximum(shift(y, -G), shift(y, -G - 1)))
        a = p * mask_refs[li + 1][...]                        # interior grows to S+1

    # ---- FC: grid-mapped weight multiply + per-batch lane reduction on MXU ----
    prod = a * wfc_ref[...]                                   # (F, n_pad)
    t8 = jnp.dot(prod, sel_ref[...], preferred_element_type=jnp.float32)  # (F, 128)
    out_ref[...] = jnp.sum(t8, axis=0, keepdims=True) + bfc_ref[...]


def _fused_forward(xg, kp, *, G):
    conv_ws, conv_bs, masks = kp["conv_ws"], kp["conv_bs"], kp["masks"]
    n_layers = len(conv_ws)
    n_pad = xg.shape[1]

    kernel = functools.partial(_fused_forward_kernel, n_layers=n_layers,
                               G=G, n_pad=n_pad)
    inputs = [xg]
    for w, b in zip(conv_ws, conv_bs):
        inputs += [w, b]
    inputs += list(masks) + [kp["wfc"], kp["sel"], kp["bfc"]]

    return pl.pallas_call(
        kernel,
        out_shape=jax.ShapeDtypeStruct((1, 128), jnp.float32),
        in_specs=[_VMEM] * len(inputs),
        out_specs=_VMEM,
    )(*inputs)


def prepare_kernel_params(params, batch_size):
    """One-time (outside jit) reformat of PyTorch-layout params into the
    lane-dense kernel layouts (plus precomputed masks / FC grid / selector)."""
    convs = [params["conv1"]] + list(params["res"])
    n_layers = len(convs)
    F = int(convs[0][0].shape[0])
    wf, bf = params["fc"]
    Sf = int(round((int(wf.shape[1]) // F) ** 0.5))     # final spatial size
    S0 = Sf - n_layers                                   # input spatial size
    G = Sf + 2                                           # padded grid side
    N = batch_size * G * G
    n_pad = _round_up(N, 128)

    conv_ws, conv_bs = [], []
    for w, b in convs:                                   # w: OIHW (F, Cin, 3, 3)
        w = jnp.asarray(w, jnp.float32)
        cout, cin = int(w.shape[0]), int(w.shape[1])
        conv_ws.append(jnp.transpose(w, (2, 3, 0, 1)).reshape(9, cout, cin))
        conv_bs.append(jnp.asarray(b, jnp.float32).reshape(cout, 1))

    # Interior masks (1, n_pad) for spatial sizes S0 .. S0 + n_layers.
    ii = jnp.arange(G)
    masks = []
    for k in range(n_layers + 1):
        S = S0 + k
        in_rng = (ii >= 1) & (ii <= S)
        m2 = (in_rng[:, None] & in_rng[None, :]).astype(jnp.float32)    # (G, G)
        m = jnp.tile(m2.reshape(1, G * G), (1, batch_size))             # (1, B*G*G)
        masks.append(jnp.pad(m, ((0, 0), (0, n_pad - N))))

    # FC weight mapped onto the padded grid (NCHW flatten order folded in).
    wf3 = jnp.asarray(wf, jnp.float32).reshape(F, Sf, Sf)
    wgrid = jnp.zeros((F, G, G), jnp.float32).at[:, 1:Sf + 1, 1:Sf + 1].set(wf3)
    wgrid = jnp.tile(wgrid.reshape(F, 1, G * G), (1, batch_size, 1))
    wfc = jnp.pad(wgrid.reshape(F, N), ((0, 0), (0, n_pad - N)))

    # Per-batch lane selector: sel[n, b] = 1 iff lane n belongs to batch b.
    sel = jnp.zeros((n_pad, 128), jnp.float32)
    for b in range(batch_size):
        sel = sel.at[b * G * G:(b + 1) * G * G, b].set(1.0)

    bfc = jnp.asarray(jnp.broadcast_to(
        jnp.asarray(bf, jnp.float32).reshape(1, 1), (1, 128)))

    return {"conv_ws": tuple(conv_ws), "conv_bs": tuple(conv_bs),
            "masks": tuple(masks), "wfc": wfc, "sel": sel, "bfc": bfc}


@jax.jit
def model_forward(x_nchw, kparams):
    B, C0, H, W = x_nchw.shape
    n_layers = len(kparams["conv_ws"])
    G = H + n_layers + 2
    n_pad = kparams["masks"][0].shape[1]
    # Place the input onto the lane-flattened padded grid (tiny XLA glue).
    xg = jnp.transpose(x_nchw, (1, 0, 2, 3)).astype(jnp.float32)       # (C, B, H, W)
    xg = jnp.pad(xg, ((0, 0), (0, 0), (1, G - 1 - H), (1, G - 1 - W)))  # (C, B, G, G)
    xg = jnp.pad(xg.reshape(C0, B * G * G), ((0, 0), (0, n_pad - B * G * G)))
    out = _fused_forward(xg, kparams, G=G)                              # (1, 128)
    return out[0, :B].reshape(B, 1)


def reference_forward(x_nchw, params):
    """Pure-JAX (XLA) reference mirroring the PyTorch forward exactly."""
    hp = jax.lax.Precision.HIGHEST

    def conv(x, w, b):
        y = jax.lax.conv_general_dilated(
            x, w, window_strides=(1, 1), padding="SAME",
            dimension_numbers=("NCHW", "OIHW", "NCHW"), precision=hp)
        return y + b[None, :, None, None]

    def pool(x):
        return jax.lax.reduce_window(
            x, -jnp.inf, jax.lax.max,
            window_dimensions=(1, 1, 2, 2), window_strides=(1, 1, 1, 1),
            padding=((0, 0), (0, 0), (1, 1), (1, 1)))

    w1, b1 = params["conv1"]
    y = pool(jax.nn.relu(conv(x_nchw, w1, b1)))
    for w, b in params["res"]:
        y = pool(jax.nn.relu(conv(y, w, b)))
    yf = y.reshape(y.shape[0], -1)
    wf, bf = params["fc"]
    return jnp.dot(yf, wf.T, precision=hp) + bf[None, :]


if __name__ == "__main__":
    number_of_convolutions = 2
    number_of_filters = 8
    B, CIN, H, W = 2, 16, 8, 8            # module hard-codes 16 in-channels & 8x8 spatial

    key = jax.random.PRNGKey(0)
    keys = jax.random.split(key, 2 + 2 * number_of_convolutions + 2 + 1)
    ki = iter(keys)

    params = {
        "conv1": (
            0.1 * jax.random.normal(next(ki), (number_of_filters, CIN, 3, 3), jnp.float32),
            0.1 * jax.random.normal(next(ki), (number_of_filters,), jnp.float32),
        ),
        "res": [
            (
                0.1 * jax.random.normal(next(ki), (number_of_filters, number_of_filters, 3, 3), jnp.float32),
                0.1 * jax.random.normal(next(ki), (number_of_filters,), jnp.float32),
            )
            for _ in range(number_of_convolutions)
        ],
    }
    D = number_of_filters * (8 + number_of_convolutions + 1) ** 2
    params["fc"] = (
        0.05 * jax.random.normal(next(ki), (1, D), jnp.float32),
        0.05 * jax.random.normal(next(ki), (1,), jnp.float32),
    )

    x = jax.random.normal(next(ki), (B, CIN, H, W), jnp.float32)

    kparams = prepare_kernel_params(params, batch_size=B)   # one-time reformat, outside jit

    out = jax.block_until_ready(model_forward(x, kparams))
    ref = jax.block_until_ready(reference_forward(x, params))

    assert out.shape == (B, 1), out.shape
    assert bool(jnp.allclose(out, ref, rtol=5e-3, atol=5e-3)), (out, ref)
    print("KERNEL_OK")
</pallas_src>

<mosaic_0001>
module attributes {stable_mosaic.version = 11 : i64} {
  func.func @_fused_forward_kernel(%arg0: memref<16x384xf32, #tpu.memory_space<vmem>>, %arg1: memref<9x8x16xf32, #tpu.memory_space<vmem>>, %arg2: memref<8x1xf32, #tpu.memory_space<vmem>>, %arg3: memref<9x8x8xf32, #tpu.memory_space<vmem>>, %arg4: memref<8x1xf32, #tpu.memory_space<vmem>>, %arg5: memref<9x8x8xf32, #tpu.memory_space<vmem>>, %arg6: memref<8x1xf32, #tpu.memory_space<vmem>>, %arg7: memref<1x384xf32, #tpu.memory_space<vmem>>, %arg8: memref<1x384xf32, #tpu.memory_space<vmem>>, %arg9: memref<1x384xf32, #tpu.memory_space<vmem>>, %arg10: memref<1x384xf32, #tpu.memory_space<vmem>>, %arg11: memref<8x384xf32, #tpu.memory_space<vmem>>, %arg12: memref<384x128xf32, #tpu.memory_space<vmem>>, %arg13: memref<1x128xf32, #tpu.memory_space<vmem>>, %arg14: memref<1x128xf32, #tpu.memory_space<vmem>>) attributes {dimension_semantics = [], scalar_prefetch = 0 : i64, scratch_operands = 0 : i64, tpu.core_type = #tpu.core_type<tc>} {
    %c0 = arith.constant 0 : index
    %c0_0 = arith.constant 0 : index
    %0 = vector.load %arg0[%c0, %c0_0] : memref<16x384xf32, #tpu.memory_space<vmem>>, vector<16x384xf32>
    %c14_i32 = arith.constant 14 : i32
    %1 = tpu.dynamic_rotate %0 by %c14_i32 dim 1 : vector<16x384xf32>, i32 -> vector<16x384xf32>
    %c0_1 = arith.constant 0 : index
    %c0_2 = arith.constant 0 : index
    %c0_3 = arith.constant 0 : index
    %2 = vector.load %arg1[%c0_1, %c0_2, %c0_3] : memref<9x8x16xf32, #tpu.memory_space<vmem>>, vector<1x8x16xf32>
    %3 = vector.shape_cast %2 : vector<1x8x16xf32> to vector<8x16xf32>
    %cst = arith.constant dense<0.000000e+00> : vector<8x384xf32>
    %4 = tpu.matmul %3, %1, %cst {dimension_numbers = #tpu.dot_dimension_numbers<[1], [0], [0], [1], [0, 0, 1, 1], [], []>} : vector<8x16xf32>, vector<16x384xf32>, vector<8x384xf32> -> vector<8x384xf32>
    %c13_i32 = arith.constant 13 : i32
    %5 = tpu.dynamic_rotate %0 by %c13_i32 dim 1 : vector<16x384xf32>, i32 -> vector<16x384xf32>
    %c1 = arith.constant 1 : index
    %c0_4 = arith.constant 0 : index
    %c0_5 = arith.constant 0 : index
    %6 = vector.load %arg1[%c1, %c0_4, %c0_5] : memref<9x8x16xf32, #tpu.memory_space<vmem>>, vector<1x8x16xf32>
    %7 = vector.shape_cast %6 : vector<1x8x16xf32> to vector<8x16xf32>
    %cst_6 = arith.constant dense<0.000000e+00> : vector<8x384xf32>
    %8 = tpu.matmul %7, %5, %cst_6 {dimension_numbers = #tpu.dot_dimension_numbers<[1], [0], [0], [1], [0, 0, 1, 1], [], []>} : vector<8x16xf32>, vector<16x384xf32>, vector<8x384xf32> -> vector<8x384xf32>
    %9 = arith.addf %4, %8 : vector<8x384xf32>
    %c12_i32 = arith.constant 12 : i32
    %10 = tpu.dynamic_rotate %0 by %c12_i32 dim 1 : vector<16x384xf32>, i32 -> vector<16x384xf32>
    %c2 = arith.constant 2 : index
    %c0_7 = arith.constant 0 : index
    %c0_8 = arith.constant 0 : index
    %11 = vector.load %arg1[%c2, %c0_7, %c0_8] : memref<9x8x16xf32, #tpu.memory_space<vmem>>, vector<1x8x16xf32>
    %12 = vector.shape_cast %11 : vector<1x8x16xf32> to vector<8x16xf32>
    %cst_9 = arith.constant dense<0.000000e+00> : vector<8x384xf32>
    %13 = tpu.matmul %12, %10, %cst_9 {dimension_numbers = #tpu.dot_dimension_numbers<[1], [0], [0], [1], [0, 0, 1, 1], [], []>} : vector<8x16xf32>, vector<16x384xf32>, vector<8x384xf32> -> vector<8x384xf32>
    %14 = arith.addf %9, %13 : vector<8x384xf32>
    %c1_i32 = arith.constant 1 : i32
    %15 = tpu.dynamic_rotate %0 by %c1_i32 dim 1 : vector<16x384xf32>, i32 -> vector<16x384xf32>
    %c3 = arith.constant 3 : index
    %c0_10 = arith.constant 0 : index
    %c0_11 = arith.constant 0 : index
    %16 = vector.load %arg1[%c3, %c0_10, %c0_11] : memref<9x8x16xf32, #tpu.memory_space<vmem>>, vector<1x8x16xf32>
    %17 = vector.shape_cast %16 : vector<1x8x16xf32> to vector<8x16xf32>
    %cst_12 = arith.constant dense<0.000000e+00> : vector<8x384xf32>
    %18 = tpu.matmul %17, %15, %cst_12 {dimension_numbers = #tpu.dot_dimension_numbers<[1], [0], [0], [1], [0, 0, 1, 1], [], []>} : vector<8x16xf32>, vector<16x384xf32>, vector<8x384xf32> -> vector<8x384xf32>
    %19 = arith.addf %14, %18 : vector<8x384xf32>
    %c4 = arith.constant 4 : index
    %c0_13 = arith.constant 0 : index
    %c0_14 = arith.constant 0 : index
    %20 = vector.load %arg1[%c4, %c0_13, %c0_14] : memref<9x8x16xf32, #tpu.memory_space<vmem>>, vector<1x8x16xf32>
    %21 = vector.shape_cast %20 : vector<1x8x16xf32> to vector<8x16xf32>
    %cst_15 = arith.constant dense<0.000000e+00> : vector<8x384xf32>
    %22 = tpu.matmul %21, %0, %cst_15 {dimension_numbers = #tpu.dot_dimension_numbers<[1], [0], [0], [1], [0, 0, 1, 1], [], []>} : vector<8x16xf32>, vector<16x384xf32>, vector<8x384xf32> -> vector<8x384xf32>
    %23 = arith.addf %19, %22 : vector<8x384xf32>
    %c383_i32 = arith.constant 383 : i32
    %24 = tpu.dynamic_rotate %0 by %c383_i32 dim 1 : vector<16x384xf32>, i32 -> vector<16x384xf32>
    %c5 = arith.constant 5 : index
    %c0_16 = arith.constant 0 : index
    %c0_17 = arith.constant 0 : index
    %25 = vector.load %arg1[%c5, %c0_16, %c0_17] : memref<9x8x16xf32, #tpu.memory_space<vmem>>, vector<1x8x16xf32>
    %26 = vector.shape_cast %25 : vector<1x8x16xf32> to vector<8x16xf32>
    %cst_18 = arith.constant dense<0.000000e+00> : vector<8x384xf32>
    %27 = tpu.matmul %26, %24, %cst_18 {dimension_numbers = #tpu.dot_dimension_numbers<[1], [0], [0], [1], [0, 0, 1, 1], [], []>} : vector<8x16xf32>, vector<16x384xf32>, vector<8x384xf32> -> vector<8x384xf32>
    %28 = arith.addf %23, %27 : vector<8x384xf32>
    %c372_i32 = arith.constant 372 : i32
    %29 = tpu.dynamic_rotate %0 by %c372_i32 dim 1 : vector<16x384xf32>, i32 -> vector<16x384xf32>
    %c6 = arith.constant 6 : index
    %c0_19 = arith.constant 0 : index
    %c0_20 = arith.constant 0 : index
    %30 = vector.load %arg1[%c6, %c0_19, %c0_20] : memref<9x8x16xf32, #tpu.memory_space<vmem>>, vector<1x8x16xf32>
    %31 = vector.shape_cast %30 : vector<1x8x16xf32> to vector<8x16xf32>
    %cst_21 = arith.constant dense<0.000000e+00> : vector<8x384xf32>
    %32 = tpu.matmul %31, %29, %cst_21 {dimension_numbers = #tpu.dot_dimension_numbers<[1], [0], [0], [1], [0, 0, 1, 1], [], []>} : vector<8x16xf32>, vector<16x384xf32>, vector<8x384xf32> -> vector<8x384xf32>
    %33 = arith.addf %28, %32 : vector<8x384xf32>
    %c371_i32 = arith.constant 371 : i32
    %34 = tpu.dynamic_rotate %0 by %c371_i32 dim 1 : vector<16x384xf32>, i32 -> vector<16x384xf32>
    %c7 = arith.constant 7 : index
    %c0_22 = arith.constant 0 : index
    %c0_23 = arith.constant 0 : index
    %35 = vector.load %arg1[%c7, %c0_22, %c0_23] : memref<9x8x16xf32, #tpu.memory_space<vmem>>, vector<1x8x16xf32>
    %36 = vector.shape_cast %35 : vector<1x8x16xf32> to vector<8x16xf32>
    %cst_24 = arith.constant dense<0.000000e+00> : vector<8x384xf32>
    %37 = tpu.matmul %36, %34, %cst_24 {dimension_numbers = #tpu.dot_dimension_numbers<[1], [0], [0], [1], [0, 0, 1, 1], [], []>} : vector<8x16xf32>, vector<16x384xf32>, vector<8x384xf32> -> vector<8x384xf32>
    %38 = arith.addf %33, %37 : vector<8x384xf32>
    %c370_i32 = arith.constant 370 : i32
    %39 = tpu.dynamic_rotate %0 by %c370_i32 dim 1 : vector<16x384xf32>, i32 -> vector<16x384xf32>
    %c8 = arith.constant 8 : index
    %c0_25 = arith.constant 0 : index
    %c0_26 = arith.constant 0 : index
    %40 = vector.load %arg1[%c8, %c0_25, %c0_26] : memref<9x8x16xf32, #tpu.memory_space<vmem>>, vector<1x8x16xf32>
    %41 = vector.shape_cast %40 : vector<1x8x16xf32> to vector<8x16xf32>
    %cst_27 = arith.constant dense<0.000000e+00> : vector<8x384xf32>
    %42 = tpu.matmul %41, %39, %cst_27 {dimension_numbers = #tpu.dot_dimension_numbers<[1], [0], [0], [1], [0, 0, 1, 1], [], []>} : vector<8x16xf32>, vector<16x384xf32>, vector<8x384xf32> -> vector<8x384xf32>
    %43 = arith.addf %38, %42 : vector<8x384xf32>
    %c0_28 = arith.constant 0 : index
    %c0_29 = arith.constant 0 : index
    %44 = vector.load %arg2[%c0_28, %c0_29] : memref<8x1xf32, #tpu.memory_space<vmem>>, vector<8x1xf32>
    %45 = vector.broadcast %44 : vector<8x1xf32> to vector<8x384xf32>
    %46 = arith.addf %43, %45 : vector<8x384xf32>
    %cst_30 = arith.constant 0.000000e+00 : f32
    %47 = vector.broadcast %cst_30 : f32 to vector<8x384xf32>
    %48 = arith.maximumf %46, %47 : vector<8x384xf32>
    %c0_31 = arith.constant 0 : index
    %c0_32 = arith.constant 0 : index
    %49 = vector.load %arg7[%c0_31, %c0_32] : memref<1x384xf32, #tpu.memory_space<vmem>>, vector<1x384xf32>
    %50 = vector.broadcast %49 : vector<1x384xf32> to vector<8x384xf32>
    %51 = arith.mulf %48, %50 : vector<8x384xf32>
    %c1_i32_33 = arith.constant 1 : i32
    %52 = tpu.dynamic_rotate %51 by %c1_i32_33 dim 1 : vector<8x384xf32>, i32 -> vector<8x384xf32>
    %53 = arith.maximumf %51, %52 : vector<8x384xf32>
    %c13_i32_34 = arith.constant 13 : i32
    %54 = tpu.dynamic_rotate %51 by %c13_i32_34 dim 1 : vector<8x384xf32>, i32 -> vector<8x384xf32>
    %c14_i32_35 = arith.constant 14 : i32
    %55 = tpu.dynamic_rotate %51 by %c14_i32_35 dim 1 : vector<8x384xf32>, i32 -> vector<8x384xf32>
    %56 = arith.maximumf %54, %55 : vector<8x384xf32>
    %57 = arith.maximumf %53, %56 : vector<8x384xf32>
    %c0_36 = arith.constant 0 : index
    %c0_37 = arith.constant 0 : index
    %58 = vector.load %arg8[%c0_36, %c0_37] : memref<1x384xf32, #tpu.memory_space<vmem>>, vector<1x384xf32>
    %59 = vector.broadcast %58 : vector<1x384xf32> to vector<8x384xf32>
    %60 = arith.mulf %57, %59 : vector<8x384xf32>
    %c14_i32_38 = arith.constant 14 : i32
    %61 = tpu.dynamic_rotate %60 by %c14_i32_38 dim 1 : vector<8x384xf32>, i32 -> vector<8x384xf32>
    %c0_39 = arith.constant 0 : index
    %c0_40 = arith.constant 0 : index
    %c0_41 = arith.constant 0 : index
    %62 = vector.load %arg3[%c0_39, %c0_40, %c0_41] : memref<9x8x8xf32, #tpu.memory_space<vmem>>, vector<1x8x8xf32>
    %63 = vector.shape_cast %62 : vector<1x8x8xf32> to vector<8x8xf32>
    %cst_42 = arith.constant dense<0.000000e+00> : vector<8x384xf32>
    %64 = tpu.matmul %63, %61, %cst_42 {dimension_numbers = #tpu.dot_dimension_numbers<[1], [0], [0], [1], [0, 0, 1, 1], [], []>} : vector<8x8xf32>, vector<8x384xf32>, vector<8x384xf32> -> vector<8x384xf32>
    %c13_i32_43 = arith.constant 13 : i32
    %65 = tpu.dynamic_rotate %60 by %c13_i32_43 dim 1 : vector<8x384xf32>, i32 -> vector<8x384xf32>
    %c1_44 = arith.constant 1 : index
    %c0_45 = arith.constant 0 : index
    %c0_46 = arith.constant 0 : index
    %66 = vector.load %arg3[%c1_44, %c0_45, %c0_46] : memref<9x8x8xf32, #tpu.memory_space<vmem>>, vector<1x8x8xf32>
    %67 = vector.shape_cast %66 : vector<1x8x8xf32> to vector<8x8xf32>
    %cst_47 = arith.constant dense<0.000000e+00> : vector<8x384xf32>
    %68 = tpu.matmul %67, %65, %cst_47 {dimension_numbers = #tpu.dot_dimension_numbers<[1], [0], [0], [1], [0, 0, 1, 1], [], []>} : vector<8x8xf32>, vector<8x384xf32>, vector<8x384xf32> -> vector<8x384xf32>
    %69 = arith.addf %64, %68 : vector<8x384xf32>
    %c12_i32_48 = arith.constant 12 : i32
    %70 = tpu.dynamic_rotate %60 by %c12_i32_48 dim 1 : vector<8x384xf32>, i32 -> vector<8x384xf32>
    %c2_49 = arith.constant 2 : index
    %c0_50 = arith.constant 0 : index
    %c0_51 = arith.constant 0 : index
    %71 = vector.load %arg3[%c2_49, %c0_50, %c0_51] : memref<9x8x8xf32, #tpu.memory_space<vmem>>, vector<1x8x8xf32>
    %72 = vector.shape_cast %71 : vector<1x8x8xf32> to vector<8x8xf32>
    %cst_52 = arith.constant dense<0.000000e+00> : vector<8x384xf32>
    %73 = tpu.matmul %72, %70, %cst_52 {dimension_numbers = #tpu.dot_dimension_numbers<[1], [0], [0], [1], [0, 0, 1, 1], [], []>} : vector<8x8xf32>, vector<8x384xf32>, vector<8x384xf32> -> vector<8x384xf32>
    %74 = arith.addf %69, %73 : vector<8x384xf32>
    %c1_i32_53 = arith.constant 1 : i32
    %75 = tpu.dynamic_rotate %60 by %c1_i32_53 dim 1 : vector<8x384xf32>, i32 -> vector<8x384xf32>
    %c3_54 = arith.constant 3 : index
    %c0_55 = arith.constant 0 : index
    %c0_56 = arith.constant 0 : index
    %76 = vector.load %arg3[%c3_54, %c0_55, %c0_56] : memref<9x8x8xf32, #tpu.memory_space<vmem>>, vector<1x8x8xf32>
    %77 = vector.shape_cast %76 : vector<1x8x8xf32> to vector<8x8xf32>
    %cst_57 = arith.constant dense<0.000000e+00> : vector<8x384xf32>
    %78 = tpu.matmul %77, %75, %cst_57 {dimension_numbers = #tpu.dot_dimension_numbers<[1], [0], [0], [1], [0, 0, 1, 1], [], []>} : vector<8x8xf32>, vector<8x384xf32>, vector<8x384xf32> -> vector<8x384xf32>
    %79 = arith.addf %74, %78 : vector<8x384xf32>
    %c4_58 = arith.constant 4 : index
    %c0_59 = arith.constant 0 : index
    %c0_60 = arith.constant 0 : index
    %80 = vector.load %arg3[%c4_58, %c0_59, %c0_60] : memref<9x8x8xf32, #tpu.memory_space<vmem>>, vector<1x8x8xf32>
    %81 = vector.shape_cast %80 : vector<1x8x8xf32> to vector<8x8xf32>
    %cst_61 = arith.constant dense<0.000000e+00> : vector<8x384xf32>
    %82 = tpu.matmul %81, %60, %cst_61 {dimension_numbers = #tpu.dot_dimension_numbers<[1], [0], [0], [1], [0, 0, 1, 1], [], []>} : vector<8x8xf32>, vector<8x384xf32>, vector<8x384xf32> -> vector<8x384xf32>
    %83 = arith.addf %79, %82 : vector<8x384xf32>
    %c383_i32_62 = arith.constant 383 : i32
    %84 = tpu.dynamic_rotate %60 by %c383_i32_62 dim 1 : vector<8x384xf32>, i32 -> vector<8x384xf32>
    %c5_63 = arith.constant 5 : index
    %c0_64 = arith.constant 0 : index
    %c0_65 = arith.constant 0 : index
    %85 = vector.load %arg3[%c5_63, %c0_64, %c0_65] : memref<9x8x8xf32, #tpu.memory_space<vmem>>, vector<1x8x8xf32>
    %86 = vector.shape_cast %85 : vector<1x8x8xf32> to vector<8x8xf32>
    %cst_66 = arith.constant dense<0.000000e+00> : vector<8x384xf32>
    %87 = tpu.matmul %86, %84, %cst_66 {dimension_numbers = #tpu.dot_dimension_numbers<[1], [0], [0], [1], [0, 0, 1, 1], [], []>} : vector<8x8xf32>, vector<8x384xf32>, vector<8x384xf32> -> vector<8x384xf32>
    %88 = arith.addf %83, %87 : vector<8x384xf32>
    %c372_i32_67 = arith.constant 372 : i32
    %89 = tpu.dynamic_rotate %60 by %c372_i32_67 dim 1 : vector<8x384xf32>, i32 -> vector<8x384xf32>
    %c6_68 = arith.constant 6 : index
    %c0_69 = arith.constant 0 : index
    %c0_70 = arith.constant 0 : index
    %90 = vector.load %arg3[%c6_68, %c0_69, %c0_70] : memref<9x8x8xf32, #tpu.memory_space<vmem>>, vector<1x8x8xf32>
    %91 = vector.shape_cast %90 : vector<1x8x8xf32> to vector<8x8xf32>
    %cst_71 = arith.constant dense<0.000000e+00> : vector<8x384xf32>
    %92 = tpu.matmul %91, %89, %cst_71 {dimension_numbers = #tpu.dot_dimension_numbers<[1], [0], [0], [1], [0, 0, 1, 1], [], []>} : vector<8x8xf32>, vector<8x384xf32>, vector<8x384xf32> -> vector<8x384xf32>
    %93 = arith.addf %88, %92 : vector<8x384xf32>
    %c371_i32_72 = arith.constant 371 : i32
    %94 = tpu.dynamic_rotate %60 by %c371_i32_72 dim 1 : vector<8x384xf32>, i32 -> vector<8x384xf32>
    %c7_73 = arith.constant 7 : index
    %c0_74 = arith.constant 0 : index
    %c0_75 = arith.constant 0 : index
    %95 = vector.load %arg3[%c7_73, %c0_74, %c0_75] : memref<9x8x8xf32, #tpu.memory_space<vmem>>, vector<1x8x8xf32>
    %96 = vector.shape_cast %95 : vector<1x8x8xf32> to vector<8x8xf32>
    %cst_76 = arith.constant dense<0.000000e+00> : vector<8x384xf32>
    %97 = tpu.matmul %96, %94, %cst_76 {dimension_numbers = #tpu.dot_dimension_numbers<[1], [0], [0], [1], [0, 0, 1, 1], [], []>} : vector<8x8xf32>, vector<8x384xf32>, vector<8x384xf32> -> vector<8x384xf32>
    %98 = arith.addf %93, %97 : vector<8x384xf32>
    %c370_i32_77 = arith.constant 370 : i32
    %99 = tpu.dynamic_rotate %60 by %c370_i32_77 dim 1 : vector<8x384xf32>, i32 -> vector<8x384xf32>
    %c8_78 = arith.constant 8 : index
    %c0_79 = arith.constant 0 : index
    %c0_80 = arith.constant 0 : index
    %100 = vector.load %arg3[%c8_78, %c0_79, %c0_80] : memref<9x8x8xf32, #tpu.memory_space<vmem>>, vector<1x8x8xf32>
    %101 = vector.shape_cast %100 : vector<1x8x8xf32> to vector<8x8xf32>
    %cst_81 = arith.constant dense<0.000000e+00> : vector<8x384xf32>
    %102 = tpu.matmul %101, %99, %cst_81 {dimension_numbers = #tpu.dot_dimension_numbers<[1], [0], [0], [1], [0, 0, 1, 1], [], []>} : vector<8x8xf32>, vector<8x384xf32>, vector<8x384xf32> -> vector<8x384xf32>
    %103 = arith.addf %98, %102 : vector<8x384xf32>
    %c0_82 = arith.constant 0 : index
    %c0_83 = arith.constant 0 : index
    %104 = vector.load %arg4[%c0_82, %c0_83] : memref<8x1xf32, #tpu.memory_space<vmem>>, vector<8x1xf32>
    %105 = vector.broadcast %104 : vector<8x1xf32> to vector<8x384xf32>
    %106 = arith.addf %103, %105 : vector<8x384xf32>
    %cst_84 = arith.constant 0.000000e+00 : f32
    %107 = vector.broadcast %cst_84 : f32 to vector<8x384xf32>
    %108 = arith.maximumf %106, %107 : vector<8x384xf32>
    %c0_85 = arith.constant 0 : index
    %c0_86 = arith.constant 0 : index
    %109 = vector.load %arg8[%c0_85, %c0_86] : memref<1x384xf32, #tpu.memory_space<vmem>>, vector<1x384xf32>
    %110 = vector.broadcast %109 : vector<1x384xf32> to vector<8x384xf32>
    %111 = arith.mulf %108, %110 : vector<8x384xf32>
    %c1_i32_87 = arith.constant 1 : i32
    %112 = tpu.dynamic_rotate %111 by %c1_i32_87 dim 1 : vector<8x384xf32>, i32 -> vector<8x384xf32>
    %113 = arith.maximumf %111, %112 : vector<8x384xf32>
    %c13_i32_88 = arith.constant 13 : i32
    %114 = tpu.dynamic_rotate %111 by %c13_i32_88 dim 1 : vector<8x384xf32>, i32 -> vector<8x384xf32>
    %c14_i32_89 = arith.constant 14 : i32
    %115 = tpu.dynamic_rotate %111 by %c14_i32_89 dim 1 : vector<8x384xf32>, i32 -> vector<8x384xf32>
    %116 = arith.maximumf %114, %115 : vector<8x384xf32>
    %117 = arith.maximumf %113, %116 : vector<8x384xf32>
    %c0_90 = arith.constant 0 : index
    %c0_91 = arith.constant 0 : index
    %118 = vector.load %arg9[%c0_90, %c0_91] : memref<1x384xf32, #tpu.memory_space<vmem>>, vector<1x384xf32>
    %119 = vector.broadcast %118 : vector<1x384xf32> to vector<8x384xf32>
    %120 = arith.mulf %117, %119 : vector<8x384xf32>
    %c14_i32_92 = arith.constant 14 : i32
    %121 = tpu.dynamic_rotate %120 by %c14_i32_92 dim 1 : vector<8x384xf32>, i32 -> vector<8x384xf32>
    %c0_93 = arith.constant 0 : index
    %c0_94 = arith.constant 0 : index
    %c0_95 = arith.constant 0 : index
    %122 = vector.load %arg5[%c0_93, %c0_94, %c0_95] : memref<9x8x8xf32, #tpu.memory_space<vmem>>, vector<1x8x8xf32>
    %123 = vector.shape_cast %122 : vector<1x8x8xf32> to vector<8x8xf32>
    %cst_96 = arith.constant dense<0.000000e+00> : vector<8x384xf32>
    %124 = tpu.matmul %123, %121, %cst_96 {dimension_numbers = #tpu.dot_dimension_numbers<[1], [0], [0], [1], [0, 0, 1, 1], [], []>} : vector<8x8xf32>, vector<8x384xf32>, vector<8x384xf32> -> vector<8x384xf32>
    %c13_i32_97 = arith.constant 13 : i32
    %125 = tpu.dynamic_rotate %120 by %c13_i32_97 dim 1 : vector<8x384xf32>, i32 -> vector<8x384xf32>
    %c1_98 = arith.constant 1 : index
    %c0_99 = arith.constant 0 : index
    %c0_100 = arith.constant 0 : index
    %126 = vector.load %arg5[%c1_98, %c0_99, %c0_100] : memref<9x8x8xf32, #tpu.memory_space<vmem>>, vector<1x8x8xf32>
    %127 = vector.shape_cast %126 : vector<1x8x8xf32> to vector<8x8xf32>
    %cst_101 = arith.constant dense<0.000000e+00> : vector<8x384xf32>
    %128 = tpu.matmul %127, %125, %cst_101 {dimension_numbers = #tpu.dot_dimension_numbers<[1], [0], [0], [1], [0, 0, 1, 1], [], []>} : vector<8x8xf32>, vector<8x384xf32>, vector<8x384xf32> -> vector<8x384xf32>
    %129 = arith.addf %124, %128 : vector<8x384xf32>
    %c12_i32_102 = arith.constant 12 : i32
    %130 = tpu.dynamic_rotate %120 by %c12_i32_102 dim 1 : vector<8x384xf32>, i32 -> vector<8x384xf32>
    %c2_103 = arith.constant 2 : index
    %c0_104 = arith.constant 0 : index
    %c0_105 = arith.constant 0 : index
    %131 = vector.load %arg5[%c2_103, %c0_104, %c0_105] : memref<9x8x8xf32, #tpu.memory_space<vmem>>, vector<1x8x8xf32>
    %132 = vector.shape_cast %131 : vector<1x8x8xf32> to vector<8x8xf32>
    %cst_106 = arith.constant dense<0.000000e+00> : vector<8x384xf32>
    %133 = tpu.matmul %132, %130, %cst_106 {dimension_numbers = #tpu.dot_dimension_numbers<[1], [0], [0], [1], [0, 0, 1, 1], [], []>} : vector<8x8xf32>, vector<8x384xf32>, vector<8x384xf32> -> vector<8x384xf32>
    %134 = arith.addf %129, %133 : vector<8x384xf32>
    %c1_i32_107 = arith.constant 1 : i32
    %135 = tpu.dynamic_rotate %120 by %c1_i32_107 dim 1 : vector<8x384xf32>, i32 -> vector<8x384xf32>
    %c3_108 = arith.constant 3 : index
    %c0_109 = arith.constant 0 : index
    %c0_110 = arith.constant 0 : index
    %136 = vector.load %arg5[%c3_108, %c0_109, %c0_110] : memref<9x8x8xf32, #tpu.memory_space<vmem>>, vector<1x8x8xf32>
    %137 = vector.shape_cast %136 : vector<1x8x8xf32> to vector<8x8xf32>
    %cst_111 = arith.constant dense<0.000000e+00> : vector<8x384xf32>
    %138 = tpu.matmul %137, %135, %cst_111 {dimension_numbers = #tpu.dot_dimension_numbers<[1], [0], [0], [1], [0, 0, 1, 1], [], []>} : vector<8x8xf32>, vector<8x384xf32>, vector<8x384xf32> -> vector<8x384xf32>
    %139 = arith.addf %134, %138 : vector<8x384xf32>
    %c4_112 = arith.constant 4 : index
    %c0_113 = arith.constant 0 : index
    %c0_114 = arith.constant 0 : index
    %140 = vector.load %arg5[%c4_112, %c0_113, %c0_114] : memref<9x8x8xf32, #tpu.memory_space<vmem>>, vector<1x8x8xf32>
    %141 = vector.shape_cast %140 : vector<1x8x8xf32> to vector<8x8xf32>
    %cst_115 = arith.constant dense<0.000000e+00> : vector<8x384xf32>
    %142 = tpu.matmul %141, %120, %cst_115 {dimension_numbers = #tpu.dot_dimension_numbers<[1], [0], [0], [1], [0, 0, 1, 1], [], []>} : vector<8x8xf32>, vector<8x384xf32>, vector<8x384xf32> -> vector<8x384xf32>
    %143 = arith.addf %139, %142 : vector<8x384xf32>
    %c383_i32_116 = arith.constant 383 : i32
    %144 = tpu.dynamic_rotate %120 by %c383_i32_116 dim 1 : vector<8x384xf32>, i32 -> vector<8x384xf32>
    %c5_117 = arith.constant 5 : index
    %c0_118 = arith.constant 0 : index
    %c0_119 = arith.constant 0 : index
    %145 = vector.load %arg5[%c5_117, %c0_118, %c0_119] : memref<9x8x8xf32, #tpu.memory_space<vmem>>, vector<1x8x8xf32>
    %146 = vector.shape_cast %145 : vector<1x8x8xf32> to vector<8x8xf32>
    %cst_120 = arith.constant dense<0.000000e+00> : vector<8x384xf32>
    %147 = tpu.matmul %146, %144, %cst_120 {dimension_numbers = #tpu.dot_dimension_numbers<[1], [0], [0], [1], [0, 0, 1, 1], [], []>} : vector<8x8xf32>, vector<8x384xf32>, vector<8x384xf32> -> vector<8x384xf32>
    %148 = arith.addf %143, %147 : vector<8x384xf32>
    %c372_i32_121 = arith.constant 372 : i32
    %149 = tpu.dynamic_rotate %120 by %c372_i32_121 dim 1 : vector<8x384xf32>, i32 -> vector<8x384xf32>
    %c6_122 = arith.constant 6 : index
    %c0_123 = arith.constant 0 : index
    %c0_124 = arith.constant 0 : index
    %150 = vector.load %arg5[%c6_122, %c0_123, %c0_124] : memref<9x8x8xf32, #tpu.memory_space<vmem>>, vector<1x8x8xf32>
    %151 = vector.shape_cast %150 : vector<1x8x8xf32> to vector<8x8xf32>
    %cst_125 = arith.constant dense<0.000000e+00> : vector<8x384xf32>
    %152 = tpu.matmul %151, %149, %cst_125 {dimension_numbers = #tpu.dot_dimension_numbers<[1], [0], [0], [1], [0, 0, 1, 1], [], []>} : vector<8x8xf32>, vector<8x384xf32>, vector<8x384xf32> -> vector<8x384xf32>
    %153 = arith.addf %148, %152 : vector<8x384xf32>
    %c371_i32_126 = arith.constant 371 : i32
    %154 = tpu.dynamic_rotate %120 by %c371_i32_126 dim 1 : vector<8x384xf32>, i32 -> vector<8x384xf32>
    %c7_127 = arith.constant 7 : index
    %c0_128 = arith.constant 0 : index
    %c0_129 = arith.constant 0 : index
    %155 = vector.load %arg5[%c7_127, %c0_128, %c0_129] : memref<9x8x8xf32, #tpu.memory_space<vmem>>, vector<1x8x8xf32>
    %156 = vector.shape_cast %155 : vector<1x8x8xf32> to vector<8x8xf32>
    %cst_130 = arith.constant dense<0.000000e+00> : vector<8x384xf32>
    %157 = tpu.matmul %156, %154, %cst_130 {dimension_numbers = #tpu.dot_dimension_numbers<[1], [0], [0], [1], [0, 0, 1, 1], [], []>} : vector<8x8xf32>, vector<8x384xf32>, vector<8x384xf32> -> vector<8x384xf32>
    %158 = arith.addf %153, %157 : vector<8x384xf32>
    %c370_i32_131 = arith.constant 370 : i32
    %159 = tpu.dynamic_rotate %120 by %c370_i32_131 dim 1 : vector<8x384xf32>, i32 -> vector<8x384xf32>
    %c8_132 = arith.constant 8 : index
    %c0_133 = arith.constant 0 : index
    %c0_134 = arith.constant 0 : index
    %160 = vector.load %arg5[%c8_132, %c0_133, %c0_134] : memref<9x8x8xf32, #tpu.memory_space<vmem>>, vector<1x8x8xf32>
    %161 = vector.shape_cast %160 : vector<1x8x8xf32> to vector<8x8xf32>
    %cst_135 = arith.constant dense<0.000000e+00> : vector<8x384xf32>
    %162 = tpu.matmul %161, %159, %cst_135 {dimension_numbers = #tpu.dot_dimension_numbers<[1], [0], [0], [1], [0, 0, 1, 1], [], []>} : vector<8x8xf32>, vector<8x384xf32>, vector<8x384xf32> -> vector<8x384xf32>
    %163 = arith.addf %158, %162 : vector<8x384xf32>
    %c0_136 = arith.constant 0 : index
    %c0_137 = arith.constant 0 : index
    %164 = vector.load %arg6[%c0_136, %c0_137] : memref<8x1xf32, #tpu.memory_space<vmem>>, vector<8x1xf32>
    %165 = vector.broadcast %164 : vector<8x1xf32> to vector<8x384xf32>
    %166 = arith.addf %163, %165 : vector<8x384xf32>
    %cst_138 = arith.constant 0.000000e+00 : f32
    %167 = vector.broadcast %cst_138 : f32 to vector<8x384xf32>
    %168 = arith.maximumf %166, %167 : vector<8x384xf32>
    %c0_139 = arith.constant 0 : index
    %c0_140 = arith.constant 0 : index
    %169 = vector.load %arg9[%c0_139, %c0_140] : memref<1x384xf32, #tpu.memory_space<vmem>>, vector<1x384xf32>
    %170 = vector.broadcast %169 : vector<1x384xf32> to vector<8x384xf32>
    %171 = arith.mulf %168, %170 : vector<8x384xf32>
    %c1_i32_141 = arith.constant 1 : i32
    %172 = tpu.dynamic_rotate %171 by %c1_i32_141 dim 1 : vector<8x384xf32>, i32 -> vector<8x384xf32>
    %173 = arith.maximumf %171, %172 : vector<8x384xf32>
    %c13_i32_142 = arith.constant 13 : i32
    %174 = tpu.dynamic_rotate %171 by %c13_i32_142 dim 1 : vector<8x384xf32>, i32 -> vector<8x384xf32>
    %c14_i32_143 = arith.constant 14 : i32
    %175 = tpu.dynamic_rotate %171 by %c14_i32_143 dim 1 : vector<8x384xf32>, i32 -> vector<8x384xf32>
    %176 = arith.maximumf %174, %175 : vector<8x384xf32>
    %177 = arith.maximumf %173, %176 : vector<8x384xf32>
    %c0_144 = arith.constant 0 : index
    %c0_145 = arith.constant 0 : index
    %178 = vector.load %arg10[%c0_144, %c0_145] : memref<1x384xf32, #tpu.memory_space<vmem>>, vector<1x384xf32>
    %179 = vector.broadcast %178 : vector<1x384xf32> to vector<8x384xf32>
    %180 = arith.mulf %177, %179 : vector<8x384xf32>
    %c0_146 = arith.constant 0 : index
    %c0_147 = arith.constant 0 : index
    %181 = vector.load %arg11[%c0_146, %c0_147] : memref<8x384xf32, #tpu.memory_space<vmem>>, vector<8x384xf32>
    %182 = arith.mulf %180, %181 : vector<8x384xf32>
    %c0_148 = arith.constant 0 : index
    %c0_149 = arith.constant 0 : index
    %183 = vector.load %arg12[%c0_148, %c0_149] : memref<384x128xf32, #tpu.memory_space<vmem>>, vector<384x128xf32>
    %cst_150 = arith.constant dense<0.000000e+00> : vector<8x128xf32>
    %184 = tpu.matmul %182, %183, %cst_150 {dimension_numbers = #tpu.dot_dimension_numbers<[1], [0], [0], [1], [0, 0, 1, 1], [], []>} : vector<8x384xf32>, vector<384x128xf32>, vector<8x128xf32> -> vector<8x128xf32>
    %cst_151 = arith.constant dense<0.000000e+00> : vector<128xf32>
    %185 = vector.multi_reduction <add>, %184, %cst_151 [0] : vector<8x128xf32> to vector<128xf32>
    %186 = vector.shape_cast %185 : vector<128xf32> to vector<1x128xf32>
    %c0_152 = arith.constant 0 : index
    %c0_153 = arith.constant 0 : index
    %187 = vector.load %arg13[%c0_152, %c0_153] : memref<1x128xf32, #tpu.memory_space<vmem>>, vector<1x128xf32>
    %188 = arith.addf %186, %187 : vector<1x128xf32>
    %c0_154 = arith.constant 0 : index
    %c0_155 = arith.constant 0 : index
    %189 = vector.load %arg14[%c0_154, %c0_155] : memref<1x128xf32, #tpu.memory_space<vmem>>, vector<1x128xf32>
    tpu.vector_store %arg14[%c0_154, %c0_155], %188 {strides = array<i32>} : memref<1x128xf32, #tpu.memory_space<vmem>>, vector<1x128xf32>,
    return
  }
}

</mosaic_0001>

<bundles_post_ra>
// kernel: model_forward.1
= control target key start
LH: loop header
LB: loop body
LE: loop exit
PB: predicated region body
PF: predicated region fallthrough
CT: control target
= control target key end

     0   :  { %s2805_s25 = smov 13   ;;  %s2806_s26 = smov 14   ;;  %v65_v16 = vlaneseq  ;;  %vm96_vm3 = vcmask 130048   ;;  %vm904_vm9 = vcmask 64512   ;;  %s3778_s0 = inlined_call_operand.vmem [shape: f32[16,384], index: 0, kind: input, shape index: {}]   ;;  %s3779_s1 = inlined_call_operand.vmem [shape: f32[9,8,16], index: 1, kind: input, shape index: {}]   ;;  %s3780_s2 = inlined_call_operand.vmem [shape: f32[8,1], index: 2, kind: input, shape index: {}]   ;;  %s3781_s7 = inlined_call_operand.vmem [shape: f32[1,384], index: 7, kind: input, shape index: {}]   ;;  %s3782_s8 = inlined_call_operand.vmem [shape: f32[1,384], index: 8, kind: input, shape index: {}]   ;;  %s3783_s4 = inlined_call_operand.vmem [shape: f32[8,1], index: 4, kind: input, shape index: {}]   ;;  %s3784_s3 = inlined_call_operand.vmem [shape: f32[9,8,8], index: 3, kind: input, shape index: {}]   ;;  %s3785_s9 = inlined_call_operand.vmem [shape: f32[1,384], index: 9, kind: input, shape index: {}]   ;;  %s3786_s5 = inlined_call_operand.vmem [shape: f32[9,8,8], index: 5, kind: input, shape index: {}]   ;;  %s3787_s6 = inlined_call_operand.vmem [shape: f32[8,1], index: 6, kind: input, shape index: {}]   ;;  %s3788_s12 = inlined_call_operand.vmem [shape: f32[384,128], index: 12, kind: input, shape index: {}]   ;;  %s3789_s10 = inlined_call_operand.vmem [shape: f32[1,384], index: 10, kind: input, shape index: {}]   ;;  %s3790_s11 = inlined_call_operand.vmem [shape: f32[8,384], index: 11, kind: input, shape index: {}]   ;;  %s3791_s13 = inlined_call_operand.vmem [shape: f32[1,128], index: 13, kind: input, shape index: {}]   ;;  %s3792_s14 = inlined_call_operand.vmem [shape: f32[1,128], index: 14, kind: output, shape index: {}]  }
   0x1   :  { %v2892_v0 = vld [vmem:[%s3778_s0 + $0x18] sm:$0xff]  ;;  %v2897_v1 = vld [vmem:[%s3778_s0 + $0x28] sm:$0xff]  ;;  %v2909_v4 = vld [vmem:[%s3778_s0 + $0x20] sm:$0xff]  ;;  %s2807_s27 = smov 12   ;;  %s2809_s28 = smov 127  }
   0x2   :  { %v2902_v2 = vld [vmem:[%s3778_s0 + $0x8] sm:$0xff]  ;;  %v2603_v3 = vpack.i.bf16 %v2897_v1, %v2892_v0  ;;  %v2916_v6 = vld [vmem:[%s3778_s0] sm:$0xff]  ;;  %v2921_v7 = vld [vmem:[%s3778_s0 + $0x10] sm:$0xff]  ;;  %v2648_v9 = vpack.i.bf16 %v2909_v4, %v2892_v0  ;;  %s2808_s0 = smov 1   ;;  %s2810_s29 = smov 116   ;;  %v2693_v12 = vpack.i.bf16 %v2897_v1, %v2909_v4  ;;  %v2963_v17 = vand.u32 127, %v65_v16 }
   0x3   :  { %v2613_v5 = vpack.i.bf16 %v2902_v2, %v2909_v4  ;;  %v2623_v8 = vpack.i.bf16 %v2921_v7, %v2916_v6  ;;  %v2653_v10 = vpack.i.bf16 %v2902_v2, %v2916_v6  ;;  %v2658_v11 = vpack.i.bf16 %v2921_v7, %v2897_v1  ;;  %s2811_s30 = smov 115   ;;  %s2812_s15 = smov 114   ;;  %v2985_v37 = vld [vmem:[%s3779_s1 + $0x8] sm:$0xff]  ;;  %v3003_v45 = vld [vmem:[%s3779_s1] sm:$0xff]  ;;  %v3023_v58 = vld [vmem:[%s3779_s1 + $0x10] sm:$0xff] }
   0x4   :  { %2604 = vrot.lane.b32.xlu0 %v2603_v3, %s2805_s25  ;;  %v2698_v13 = vpack.i.bf16 %v2921_v7, %v2902_v2  ;;  %v2703_v14 = vpack.i.bf16 %v2916_v6, %v2892_v0  ;;  %vm235_vm0 = vcmp.lt.s32.totalorder %v2963_v17, 12  ;;  %vm87_vm1 = vcmp.lt.s32.totalorder %v2963_v17, 13 }
   0x5   :  { %2614 = vrot.lane.b32.xlu1 %v2613_v5, %s2805_s25  ;;  %2624 = vrot.lane.b32.xlu2 %v2623_v8, %s2806_s26  ;;  %vm67_vm2 = vcmp.lt.s32.totalorder %v2963_v17, 14  ;;  %vm322_vm4 = vcmp.lt.s32.totalorder %v2963_v17, 1  ;;  %vm564_vm5 = vcmp.lt.s32.totalorder %v2963_v17, 116  ;;  %vm477_vm6 = vcmp.lt.s32.totalorder %v2963_v17, 127 }
   0x6   :  { %vm651_vm7 = vcmp.lt.s32.totalorder %v2963_v17, 115  ;;  %vm738_vm8 = vcmp.lt.s32.totalorder %v2963_v17, 114 }
   0xc   :  { %2609 = vrot.lane.b32.xlu0 %v2623_v8, %s2805_s25 }
   0xd   :  { %2619 = vrot.lane.b32.xlu1 %v2603_v3, %s2806_s26  ;;  %2629 = vrot.lane.b32.xlu2 %v2603_v3, %s2807_s27 }
  0x14   :  { %2634 = vrot.lane.b32.xlu0 %v2623_v8, %s2807_s27 }
  0x15   :  { %2639 = vrot.lane.b32.xlu1 %v2613_v5, %s2806_s26  ;;  %2644 = vrot.lane.b32.xlu2 %v2613_v5, %s2807_s27 }
  0x1c   :  { %2649 = vrot.lane.b32.xlu0 %v2648_v9, %s2808_s0 }
  0x1d   :  { %2654 = vrot.lane.b32.xlu1 %v2653_v10, %s2808_s0  ;;  %2659 = vrot.lane.b32.xlu2 %v2658_v11, %s2808_s0 }
  0x24   :  { %2664 = vrot.lane.b32.xlu0 %v2648_v9, %s2809_s28 }
  0x25   :  { %2669 = vrot.lane.b32.xlu1 %v2653_v10, %s2809_s28  ;;  %2674 = vrot.lane.b32.xlu2 %v2648_v9, %s2810_s29 }
  0x2c   :  { %2679 = vrot.lane.b32.xlu0 %v2653_v10, %s2810_s29 }
  0x2d   :  { %2684 = vrot.lane.b32.xlu1 %v2658_v11, %s2809_s28  ;;  %2689 = vrot.lane.b32.xlu2 %v2658_v11, %s2810_s29 }
  0x34   :  { %2694 = vrot.lane.b32.xlu0 %v2693_v12, %s2811_s30 }
  0x35   :  { %2699 = vrot.lane.b32.xlu1 %v2698_v13, %s2811_s30  ;;  %2704 = vrot.lane.b32.xlu2 %v2703_v14, %s2811_s30 }
  0x3c   :  { %2709 = vrot.lane.b32.xlu0 %v2603_v3, %s2812_s15 }
  0x3d   :  { %2714 = vrot.lane.b32.xlu1 %v2623_v8, %s2812_s15  ;;  %2719 = vrot.lane.b32.xlu2 %v2613_v5, %s2812_s15 }
  0x5f   :  { %v2961_v15 = vpop.permute.xlu2 %2624 }
  0x60   :  { %v2627_v28 = vunpack.i.h.bf16 %v2961_v15  ;;  %v2626_v29 = vunpack.i.l.bf16 %v2961_v15 }
  0x62   :  { %v72_v42 = vsel %vm67_vm2, %v2627_v28, %v2626_v29 }
  0x67   :  { %v2965_v18 = vpop.permute.xlu2 %2629 }
  0x68   :  { %v2632_v19 = vunpack.i.h.bf16 %v2965_v18  ;;  %v2631_v20 = vunpack.i.l.bf16 %v2965_v18 }
  0x6a   :  { %v241_v21 = vsel %vm235_vm0, %v2632_v19, %v2631_v20 }
  0x6b   :  { %261 = vmatpush.msra.mxu2 %v241_v21 }
  0x6f   :  { %v2975_v26 = vpop.permute.xlu2 %2644 }
  0x70   :  { %v2646_v38 = vunpack.i.l.bf16 %v2975_v26  ;;  %v2647_v48 = vunpack.i.h.bf16 %v2975_v26 }
  0x72   :  { %v239_v46 = vsel %vm235_vm0, %v2631_v20, %v2646_v38 }
  0x76   :  { %v2605_v22 = vpop.permute.xlu0 %2604 }
  0x77   :  { %v2607_v23 = vunpack.i.h.bf16 %v2605_v22  ;;  %v2606_v24 = vunpack.i.l.bf16 %v2605_v22  ;;  %v2615_v25 = vpop.permute.xlu1 %2614  ;;  %v2990_v40 = vpop.permute.xlu2 %2659 }
  0x78   :  { %v2616_v31 = vunpack.i.l.bf16 %v2615_v25  ;;  %v2617_v43 = vunpack.i.h.bf16 %v2615_v25  ;;  %v2661_v5 = vunpack.i.l.bf16 %v2990_v40  ;;  %v2662_v8 = vunpack.i.h.bf16 %v2990_v40  ;;  %v2500_v25 = vld [vmem:[%s3779_s1 + $0x18] sm:$0xff] }
  0x79   :  { %v93_v27 = vsel %vm87_vm1, %v2607_v23, %v2606_v24 }
  0x7a   :  { %114 = vmatpush.msra.mxu0 %v93_v27  ;;  %v91_v44 = vsel %vm87_vm1, %v2606_v24, %v2616_v31  ;;  %v89_v50 = vsel %vm87_vm1, %v2616_v31, %v2607_v23  ;;  %v237_v24 = vsel %vm235_vm0, %v2646_v38, %v2632_v19 }
  0x7e   :  { %v2610_v30 = vpop.permute.xlu0 %2609 }
  0x7f   :  { %v2620_v32 = vpop.permute.xlu1 %2619  ;;  %v2612_v33 = vunpack.i.h.bf16 %v2610_v30  ;;  %v2611_v34 = vunpack.i.l.bf16 %v2610_v30  ;;  %v3025_v59 = vpop.permute.xlu2 %2674 }
  0x80   :  { %v2622_v35 = vunpack.i.h.bf16 %v2620_v32  ;;  %v2621_v36 = vunpack.i.l.bf16 %v2620_v32 }
  0x81   :  { %v92_v39 = vsel %vm87_vm1, %v2612_v33, %v2611_v34  ;;  %v90_v47 = vsel %vm87_vm1, %v2611_v34, %v2617_v43  ;;  %v88_v56 = vsel %vm87_vm1, %v2617_v43, %v2612_v33 }
  0x82   :  { %115 = vmatpush.msra.mxu0 %v92_v39  ;;  %v73_v41 = vsel %vm67_vm2, %v2622_v35, %v2621_v36 }
  0x83   :  { %177 = vmatpush.msra.mxu3 %v73_v41  ;;  %2490 = vmatmul.msk.f32.vlgmr.msra.gmra.mxu0 %vm96_vm3, %v2985_v37 }
  0x84   :  { %134 = vmatpush.msrb.mxu0 %v91_v44 }
  0x85   :  { %178 = vmatpush.msra.mxu3 %v72_v42 }
  0x86   :  { %135 = vmatpush.msrb.mxu0 %v90_v47  ;;  %2493 = vmatmul.msk.f32.vlgmr.msra.gmra.mxu3 %vm96_vm3, %v3003_v45  ;;  %v2635_v49 = vpop.permute.xlu0 %2634 }
  0x87   :  { %v2640_v51 = vpop.permute.xlu1 %2639  ;;  %v2637_v52 = vunpack.i.h.bf16 %v2635_v49  ;;  %v2636_v53 = vunpack.i.l.bf16 %v2635_v49  ;;  %281 = vmatpush.msrb.mxu3 %v239_v46  ;;  %v3071_v27 = vpop.permute.xlu2 %2689  ;;  %v813_v49 = vld [vmem:[%s3780_s2] sm:$0xff] }
  0x88   :  { %154 = vmatpush.msra.mxu0 %v89_v50  ;;  %v2642_v54 = vunpack.i.h.bf16 %v2640_v51  ;;  %v2641_v55 = vunpack.i.l.bf16 %v2640_v51  ;;  %v2691_v26 = vunpack.i.l.bf16 %v3071_v27 }
  0x89   :  { %v240_v57 = vsel %vm235_vm0, %v2637_v52, %v2636_v53  ;;  %v238_v62 = vsel %vm235_vm0, %v2636_v53, %v2647_v48  ;;  %v236_v18 = vsel %vm235_vm0, %v2647_v48, %v2637_v52  ;;  %v3131_v48 = vld [vmem:[%s3779_s1 + $0x30] sm:$0xff]  ;;  %v2813_v52 = vmov 0  }
  0x8a   :  { %155 = vmatpush.msra.mxu0 %v88_v56  ;;  %v69_v60 = vsel %vm67_vm2, %v2641_v55, %v2622_v35  ;;  %262 = vmatpush.msra.mxu2 %v240_v57  ;;  %v71_v61 = vsel %vm67_vm2, %v2621_v36, %v2641_v55  ;;  %v68_v63 = vsel %vm67_vm2, %v2642_v54, %v2627_v28  ;;  %v2677_v28 = vunpack.i.h.bf16 %v3025_v59 }
  0x8b   :  { %217 = vmatpush.msra.mxu1 %v69_v60  ;;  %2491 = vmatmul.msk.f32.vlgmr.msrb.gmra.mxu0 %vm96_vm3, %v2985_v37  ;;  %v70_v3 = vsel %vm67_vm2, %v2626_v29, %v2642_v54  ;;  %v2676_v29 = vunpack.i.l.bf16 %v3025_v59 }
  0x8c   :  { %197 = vmatpush.msrb.mxu0 %v71_v61  ;;  %2497 = vmatmul.msk.f32.vlgmr.msra.gmra.mxu2 %vm96_vm3, %v3023_v58 }
  0x8d   :  { %218 = vmatpush.msra.mxu1 %v68_v63  ;;  %282 = vmatpush.msrb.mxu3 %v238_v62  ;;  %v568_v35 = vsel %vm564_vm5, %v2676_v29, %v2677_v28 }
  0x8e   :  { %198 = vmatpush.msrb.mxu0 %v70_v3  ;;  %2495 = vmatmul.msk.f32.vlgmr.msra.gmra.mxu1 %vm96_vm3, %v3003_v45  ;;  %v2650_v9 = vpop.permute.xlu0 %2649 }
  0x8f   :  { %v2655_v10 = vpop.permute.xlu1 %2654  ;;  %v2652_v11 = vunpack.i.h.bf16 %v2650_v9  ;;  %v2651_v12 = vunpack.i.l.bf16 %v2650_v9  ;;  %2498 = vmatmul.msk.f32.vlgmr.msrb.gmra.mxu3 %vm96_vm3, %v3023_v58  ;;  %v2705_v43 = vpop.permute.xlu2 %2704  ;;  %2723 = vset.pattern.permute.xlu0 %v2813_v52 }
  0x90   :  { %v2657_v13 = vunpack.i.h.bf16 %v2655_v10  ;;  %v2656_v14 = vunpack.i.l.bf16 %v2655_v10  ;;  %v2706_v51 = vunpack.i.l.bf16 %v2705_v43  ;;  %v2707_v53 = vunpack.i.h.bf16 %v2705_v43  ;;  %816 = vperm.xlu0 %2723, %v813_v49   ;;  %2804 = vset.pattern.permute.xlu2 %v2813_v52 }
  0x91   :  { %v328_v15 = vsel %vm322_vm4, %v2661_v5, %v2651_v12  ;;  %v326_v16 = vsel %vm322_vm4, %v2651_v12, %v2652_v11  ;;  %v324_v20 = vsel %vm322_vm4, %v2652_v11, %v2661_v5  ;;  %v570_v10 = vsel %vm564_vm5, %v2691_v26, %v2676_v29  ;;  %v2516_v11 = vld [vmem:[%s3779_s1 + $0x38] sm:$0xff] }
  0x92   :  { %348 = vmatpush.msrb.mxu1 %v328_v15  ;;  %v327_v21 = vsel %vm322_vm4, %v2662_v8, %v2656_v14  ;;  %368 = vmatpush.msrb.mxu2 %v326_v16  ;;  %v325_v22 = vsel %vm322_vm4, %v2656_v14, %v2657_v13  ;;  %v323_v23 = vsel %vm322_vm4, %v2657_v13, %v2662_v8 }
  0x93   :  { %2492 = vmatmul.msk.f32.vlgmr.msra.gmra.mxu0 %vm96_vm3, %v2985_v37  ;;  %388 = vmatpush.msra.mxu3 %v324_v20  ;;  %v2504_v37 = vld [vmem:[%s3779_s1 + $0x20] sm:$0xff] }
  0x94   :  { %301 = vmatpush.msra.mxu0 %v237_v24  ;;  %349 = vmatpush.msrb.mxu1 %v327_v21 }
  0x95   :  { %369 = vmatpush.msrb.mxu2 %v325_v22  ;;  %389 = vmatpush.msra.mxu3 %v323_v23 }
  0x96   :  { %302 = vmatpush.msra.mxu0 %v236_v18  ;;  %2501 = vmatmul.msk.f32.vlgmr.msrb.gmra.mxu1 %vm96_vm3, %v2500_v25  ;;  %v2665_v19 = vpop.permute.xlu0 %2664  ;;  %v2520_v18 = vld [vmem:[%s3779_s1 + $0x40] sm:$0xff] }
  0x97   :  { %v2670_v30 = vpop.permute.xlu1 %2669  ;;  %2502 = vmatmul.msk.f32.vlgmr.msrb.gmra.mxu2 %vm96_vm3, %v2500_v25  ;;  %v2667_v31 = vunpack.i.h.bf16 %v2665_v19  ;;  %v2666_v32 = vunpack.i.l.bf16 %v2665_v19  ;;  %436 = vmatpush.msra.mxu1 %v2909_v4  ;;  %v2720_v9 = vpop.permute.xlu2 %2719 }
  0x98   :  { %v2672_v33 = vunpack.i.h.bf16 %v2670_v30  ;;  %v2671_v34 = vunpack.i.l.bf16 %v2670_v30  ;;  %456 = vmatpush.msra.mxu2 %v2897_v1  ;;  %2503 = vmatmul.msk.f32.vlgmr.msra.gmra.mxu3 %vm96_vm3, %v2500_v25  ;;  %v566_v1 = vsel %vm564_vm5, %v2677_v28, %v2691_v26  ;;  %v2721_v13 = vunpack.i.l.bf16 %v2720_v9 }
  0x99   :  { %v481_v36 = vsel %vm477_vm6, %v2666_v32, %v2667_v31  ;;  %437 = vmatpush.msra.mxu1 %v2902_v2  ;;  %v2692_v2 = vunpack.i.h.bf16 %v3071_v27  ;;  %v2722_v59 = vunpack.i.h.bf16 %v2720_v9 }
  0x9a   :  { %503 = vmatpush.msrb.mxu3 %v481_v36  ;;  %457 = vmatpush.msra.mxu2 %v2921_v7  ;;  %v480_v4 = vsel %vm477_vm6, %v2671_v34, %v2672_v33  ;;  %v3109_v7 = vld [vmem:[%s3779_s1 + $0x28] sm:$0xff] }
  0x9b   :  { %2494 = vmatmul.msk.f32.vlgmr.msrb.gmra.mxu0 %vm96_vm3, %v3003_v45 }
  0x9c   :  { %590 = vmatpush.msrb.mxu2 %v568_v35  ;;  %416 = vmatpush.msrb.mxu0 %v2892_v0 }
  0x9d   :  { %504 = vmatpush.msrb.mxu3 %v480_v4 }
  0x9e   :  { %2506 = vmatmul.msk.f32.vlgmr.msra.gmra.mxu1 %vm96_vm3, %v2504_v37  ;;  %v2680_v38 = vpop.permute.xlu0 %2679  ;;  %417 = vmatpush.msrb.mxu0 %v2916_v6 }
  0x9f   :  { %610 = vmatpush.msra.mxu3 %v566_v1  ;;  %v2685_v39 = vpop.permute.xlu1 %2684  ;;  %2507 = vmatmul.msk.f32.vlgmr.msra.gmra.mxu2 %vm96_vm3, %v2504_v37  ;;  %v2682_v40 = vunpack.i.h.bf16 %v2680_v38  ;;  %v2681_v41 = vunpack.i.l.bf16 %v2680_v38 }
  0xa0   :  { %v2687_v0 = vunpack.i.h.bf16 %v2685_v39  ;;  %v2686_v42 = vunpack.i.l.bf16 %v2685_v39  ;;  %2509 = vmatmul.msk.f32.vlgmr.msrb.gmra.mxu3 %vm96_vm3, %v3109_v7 }
  0xa1   :  { %v567_v44 = vsel %vm564_vm5, %v2681_v41, %v2682_v40  ;;  %v565_v45 = vsel %vm564_vm5, %v2682_v40, %v2692_v2  ;;  %v569_v12 = vsel %vm564_vm5, %v2692_v2, %v2681_v41 }
  0xa2   :  { %v483_v6 = vsel %vm477_vm6, %v2686_v42, %v2666_v32  ;;  %v479_v46 = vsel %vm477_vm6, %v2667_v31, %v2686_v42  ;;  %591 = vmatpush.msrb.mxu2 %v567_v44  ;;  %v482_v47 = vsel %vm477_vm6, %v2687_v0, %v2671_v34  ;;  %611 = vmatpush.msra.mxu3 %v565_v45 }
  0xa3   :  { %543 = vmatpush.msrb.mxu1 %v483_v6  ;;  %2499 = vmatmul.msk.f32.vlgmr.msra.gmra.mxu0 %vm96_vm3, %v3023_v58  ;;  %v478_v50 = vsel %vm477_vm6, %v2672_v33, %v2687_v0 }
  0xa4   :  { %523 = vmatpush.msra.mxu0 %v479_v46 }
  0xa5   :  { %544 = vmatpush.msrb.mxu1 %v482_v47 }
  0xa6   :  { %524 = vmatpush.msra.mxu0 %v478_v50  ;;  %2511 = vmatmul.msk.f32.vlgmr.msrb.gmra.mxu1 %vm96_vm3, %v3109_v7  ;;  %v2695_v54 = vpop.permute.xlu0 %2694 }
  0xa7   :  { %2513 = vmatmul.msk.f32.vlgmr.msrb.gmra.mxu2 %vm96_vm3, %v3131_v48  ;;  %v2697_v55 = vunpack.i.h.bf16 %v2695_v54  ;;  %v2696_v56 = vunpack.i.l.bf16 %v2695_v54  ;;  %v2700_v57 = vpop.permute.xlu1 %2699 }
  0xa8   :  { %v2702_v58 = vunpack.i.h.bf16 %v2700_v57  ;;  %v2701_v60 = vunpack.i.l.bf16 %v2700_v57  ;;  %2514 = vmatmul.msk.f32.vlgmr.msra.gmra.mxu3 %vm96_vm3, %v3131_v48 }
  0xa9   :  { %v655_v61 = vsel %vm651_vm7, %v2706_v51, %v2696_v56  ;;  %v653_v62 = vsel %vm651_vm7, %v2696_v56, %v2697_v55  ;;  %v657_v63 = vsel %vm651_vm7, %v2697_v55, %v2706_v51 }
  0xaa   :  { %677 = vmatpush.msra.mxu1 %v655_v61  ;;  %697 = vmatpush.msra.mxu2 %v653_v62  ;;  %v654_v3 = vsel %vm651_vm7, %v2707_v53, %v2701_v60  ;;  %v652_v5 = vsel %vm651_vm7, %v2701_v60, %v2702_v58  ;;  %v656_v8 = vsel %vm651_vm7, %v2702_v58, %v2707_v53  ;;  %v825_v61 = vld [vmem:[%s3781_s7] sm:$0x7] }
  0xab   :  { %2505 = vmatmul.msk.f32.vlgmr.msrb.gmra.mxu0 %vm96_vm3, %v2504_v37  ;;  %717 = vmatpush.msrb.mxu3 %v657_v63 }
  0xac   :  { %630 = vmatpush.msrb.mxu0 %v570_v10  ;;  %678 = vmatpush.msra.mxu1 %v654_v3  ;;  %v828_v10 = vperm.slane %v825_v61, 1 }
  0xad   :  { %698 = vmatpush.msra.mxu2 %v652_v5  ;;  %718 = vmatpush.msrb.mxu3 %v656_v8 }
  0xae   :  { %631 = vmatpush.msrb.mxu0 %v569_v12  ;;  %2517 = vmatmul.msk.f32.vlgmr.msra.gmra.mxu1 %vm96_vm3, %v2516_v11  ;;  %v2710_v14 = vpop.permute.xlu0 %2709 }
  0xaf   :  { %2518 = vmatmul.msk.f32.vlgmr.msra.gmra.mxu2 %vm96_vm3, %v2516_v11  ;;  %v2712_v15 = vunpack.i.h.bf16 %v2710_v14  ;;  %v2711_v16 = vunpack.i.l.bf16 %v2710_v14  ;;  %v2715_v20 = vpop.permute.xlu1 %2714 }
  0xb0   :  { %v2717_v21 = vunpack.i.h.bf16 %v2715_v20  ;;  %v2716_v22 = vunpack.i.l.bf16 %v2715_v20  ;;  %2519 = vmatmul.msk.f32.vlgmr.msrb.gmra.mxu3 %vm96_vm3, %v2516_v11 }
  0xb1   :  { %v742_v23 = vsel %vm738_vm8, %v2711_v16, %v2721_v13  ;;  %v740_v24 = vsel %vm738_vm8, %v2721_v13, %v2712_v15  ;;  %v744_v25 = vsel %vm738_vm8, %v2712_v15, %v2711_v16 }
  0xb2   :  { %784 = vmatpush.msrb.mxu1 %v740_v24  ;;  %804 = vmatpush.msrb.mxu2 %v744_v25  ;;  %v739_v27 = vsel %vm738_vm8, %v2722_v59, %v2717_v21  ;;  %v743_v28 = vsel %vm738_vm8, %v2717_v21, %v2716_v22  ;;  %v741_v29 = vsel %vm738_vm8, %v2716_v22, %v2722_v59 }
  0xb3   :  { %2510 = vmatmul.msk.f32.vlgmr.msra.gmra.mxu0 %vm96_vm3, %v3109_v7 }
  0xb4   :  { %764 = vmatpush.msra.mxu0 %v742_v23  ;;  %785 = vmatpush.msrb.mxu1 %v739_v27  ;;  %v829_v23 = vperm.slane %v825_v61, 2 }
  0xb5   :  { %805 = vmatpush.msrb.mxu2 %v743_v28 }
  0xb6   :  { %765 = vmatpush.msra.mxu0 %v741_v29  ;;  %2522 = vmatmul.msk.f32.vlgmr.msrb.gmra.mxu1 %vm96_vm3, %v2520_v18 }
  0xb7   :  { %2523 = vmatmul.msk.f32.vlgmr.msrb.gmra.mxu2 %vm96_vm3, %v2520_v18 }
  0xbb   :  { %2515 = vmatmul.msk.f32.vlgmr.msrb.gmra.mxu0 %vm96_vm3, %v3131_v48 }
  0xc3   :  { %2521 = vmatmul.msk.f32.vlgmr.msra.gmra.mxu0 %vm96_vm3, %v2520_v18  ;;  %v827_v18 = vperm.slane %v825_v61, 0  ;;  %v1561_v61 = vld [vmem:[%s3783_s4] sm:$0xff] }
 0x100   :  { %v117_v19 = vpop.f32.mrf.mxu0 }
 0x102   :  { %v817_v62 = vpop.permute.xlu0 %816 }
 0x108   :  { %v137_v26 = vpop.f32.mrf.mxu0 }
 0x109   :  { %v180_v30 = vpop.f32.mrf.mxu3 }
 0x10a   :  { %v181_v46 = vadd.f32 %v180_v30, %v117_v19 }
 0x10b   :  { %v220_v31 = vpop.f32.mrf.mxu1 }
 0x10f   :  { %v264_v33 = vpop.f32.mrf.mxu2 }
 0x110   :  { %v157_v32 = vpop.f32.mrf.mxu0  ;;  %v307_v48 = vadd.f32 %v264_v33, %v181_v46 }
 0x111   :  { %v221_v42 = vadd.f32 %v220_v31, %v157_v32 }
 0x112   :  { %v284_v34 = vpop.f32.mrf.mxu3 }
 0x113   :  { %v351_v35 = vpop.f32.mrf.mxu1 }
 0x114   :  { %v394_v52 = vadd.f32 %v351_v35, %v307_v48 }
 0x118   :  { %v200_v36 = vpop.f32.mrf.mxu0 }
 0x119   :  { %v201_v38 = vadd.f32 %v200_v36, %v137_v26 }
 0x11a   :  { %v371_v4 = vpop.f32.mrf.mxu2 }
 0x11b   :  { %v439_v1 = vpop.f32.mrf.mxu1  ;;  %v391_v37 = vpop.f32.mrf.mxu3  ;;  %v308_v41 = vadd.f32 %v284_v34, %v201_v38 }
 0x11d   :  { %v395_v44 = vadd.f32 %v371_v4, %v308_v41 }
 0x11f   :  { %v463_v49 = vadd.f32 %v439_v1, %v395_v44  ;;  %v3212_v1 = vld [vmem:[%s3782_s8] sm:$0x7] }
 0x120   :  { %v304_v2 = vpop.f32.mrf.mxu0  ;;  %v874_v44 = vperm.slane %v3212_v1, 0 }
 0x121   :  { %v309_v45 = vadd.f32 %v304_v2, %v221_v42 }
 0x122   :  { %v459_v7 = vpop.f32.mrf.mxu2 }
 0x123   :  { %v546_v39 = vpop.f32.mrf.mxu1  ;;  %v506_v40 = vpop.f32.mrf.mxu3  ;;  %v396_v50 = vadd.f32 %v391_v37, %v309_v45  ;;  %v876_v45 = vperm.slane %v3212_v1, 2 }
 0x125   :  { %v464_v55 = vadd.f32 %v459_v7, %v396_v50 }
 0x127   :  { %v551_v63 = vadd.f32 %v546_v39, %v464_v55  ;;  %v875_v39 = vperm.slane %v3212_v1, 1 }
 0x128   :  { %v419_v0 = vpop.f32.mrf.mxu0 }
 0x129   :  { %v462_v56 = vadd.f32 %v419_v0, %v394_v52 }
 0x12a   :  { %v593_v43 = vpop.f32.mrf.mxu2 }
 0x12b   :  { %v680_v6 = vpop.f32.mrf.mxu1  ;;  %v613_v47 = vpop.f32.mrf.mxu3  ;;  %v549_v3 = vadd.f32 %v506_v40, %v462_v56 }
 0x12d   :  { %v636_v59 = vadd.f32 %v593_v43, %v549_v3 }
 0x12f   :  { %v723_v21 = vadd.f32 %v680_v6, %v636_v59 }
 0x130   :  { %v526_v51 = vpop.f32.mrf.mxu0 }
 0x131   :  { %v550_v53 = vadd.f32 %v526_v51, %v463_v49 }
 0x132   :  { %v700_v54 = vpop.f32.mrf.mxu2 }
 0x133   :  { %v637_v57 = vadd.f32 %v613_v47, %v550_v53  ;;  %v787_v58 = vpop.f32.mrf.mxu1  ;;  %v720_v9 = vpop.f32.mrf.mxu3 }
 0x135   :  { %v724_v60 = vadd.f32 %v700_v54, %v637_v57 }
 0x137   :  { %v811_v5 = vadd.f32 %v787_v58, %v724_v60 }
 0x138   :  { %v633_v8 = vpop.f32.mrf.mxu0 }
 0x139   :  { %v820_v11 = vadd.f32 %v817_v62, %v811_v5  ;;  %v638_v12 = vadd.f32 %v633_v8, %v551_v63  ;;  %v2524_v5 = vld [vmem:[%s3784_s3 + $0x8] sm:$0xff] }
 0x13a   :  { %v807_v13 = vpop.f32.mrf.mxu2 }
 0x13b   :  { %v823_v14 = vmax.f32 %v820_v11, 0.0  ;;  %v725_v15 = vadd.f32 %v720_v9, %v638_v12 }
 0x13d   :  { %v834_v16 = vmul.f32 %v828_v10, %v823_v14  ;;  %v812_v20 = vadd.f32 %v807_v13, %v725_v15 }
 0x13f   :  { %v821_v22 = vadd.f32 %v817_v62, %v812_v20  ;;  %850 = vrot.lane.b32.xlu0 %v834_v16, %s2805_s25  ;;  %838 = vrot.lane.b32.xlu2 %v834_v16, %s2808_s0  ;;  %v892_v20 = vld [vmem:[%s3784_s3] sm:$0xff] }
 0x140   :  { %v767_v24 = vpop.f32.mrf.mxu0 }
 0x141   :  { %v824_v25 = vmax.f32 %v821_v22, 0.0  ;;  %v810_v27 = vadd.f32 %v767_v24, %v723_v21 }
 0x143   :  { %v835_v28 = vmul.f32 %v829_v23, %v824_v25  ;;  %v819_v29 = vadd.f32 %v817_v62, %v810_v27 }
 0x145   :  { %v822_v19 = vmax.f32 %v819_v29, 0.0  ;;  %840 = vrot.lane.b32.xlu1 %v835_v28, %s2808_s0 }
 0x147   :  { %v833_v26 = vmul.f32 %v827_v18, %v822_v19  ;;  %859 = vrot.lane.b32.xlu0 %v834_v16, %s2806_s26 }
 0x149   :  { %848 = vrot.lane.b32.xlu2 %v833_v26, %s2805_s25 }
 0x14d   :  { %852 = vrot.lane.b32.xlu1 %v835_v28, %s2805_s25 }
 0x151   :  { %857 = vrot.lane.b32.xlu2 %v833_v26, %s2806_s26 }
 0x155   :  { %836 = vrot.lane.b32.xlu1 %v833_v26, %s2808_s0 }
 0x15d   :  { %861 = vrot.lane.b32.xlu1 %v835_v28, %s2806_s26 }
 0x199   :  { %v839_v30 = vpop.permute.xlu2 %838 }
 0x1a3   :  { %v849_v33 = vpop.permute.xlu2 %848 }
 0x1ab   :  { %v858_v36 = vpop.permute.xlu2 %857 }
 0x1b1   :  { %v851_v32 = vpop.permute.xlu0 %850 }
 0x1b2   :  { %v855_v2 = vsel %vm87_vm1, %v849_v33, %v851_v32 }
 0x1b7   :  { %v841_v31 = vpop.permute.xlu1 %840 }
 0x1b8   :  { %v842_v42 = vsel %vm322_vm4, %v839_v30, %v841_v31 }
 0x1b9   :  { %v860_v35 = vpop.permute.xlu0 %859  ;;  %v847_v50 = vmax.f32 %v835_v28, %v842_v42  ;;  %v2539_v42 = vld [vmem:[%s3784_s3 + $0x20] sm:$0xff] }
 0x1ba   :  { %v864_v4 = vsel %vm67_vm2, %v858_v36, %v860_v35 }
 0x1bb   :  { %v867_v38 = vmax.f32 %v855_v2, %v864_v4  ;;  %v2535_v2 = vld [vmem:[%s3784_s3 + $0x18] sm:$0xff] }
 0x1bf   :  { %v853_v34 = vpop.permute.xlu1 %852 }
 0x1c0   :  { %v854_v46 = vsel %vm87_vm1, %v851_v32, %v853_v34  ;;  %v856_v47 = vsel %vm87_vm1, %v853_v34, %v849_v33 }
 0x1c7   :  { %v837_v37 = vpop.permute.xlu1 %836 }
 0x1c8   :  { %v843_v7 = vsel %vm322_vm4, %v837_v37, %v839_v30  ;;  %v844_v43 = vsel %vm322_vm4, %v841_v31, %v837_v37 }
 0x1c9   :  { %v846_v40 = vmax.f32 %v834_v16, %v843_v7  ;;  %v845_v51 = vmax.f32 %v833_v26, %v844_v43  ;;  %v2531_v26 = vld [vmem:[%s3784_s3 + $0x10] sm:$0xff] }
 0x1cb   :  { %v870_v41 = vmax.f32 %v846_v40, %v867_v38 }
 0x1cd   :  { %v3221_v0 = vmul.f32 %v875_v39, %v870_v41 }
 0x1cf   :  { %v862_v6 = vpop.permute.xlu1 %861  ;;  %895 = vrot.lane.b32.xlu1 %v3221_v0, %s2805_s25 }
 0x1d0   :  { %v863_v48 = vsel %vm67_vm2, %v860_v35, %v862_v6  ;;  %v865_v49 = vsel %vm67_vm2, %v862_v6, %v858_v36 }
 0x1d1   :  { %v866_v52 = vmax.f32 %v856_v47, %v865_v49  ;;  %v868_v53 = vmax.f32 %v854_v46, %v863_v48 }
 0x1d3   :  { %v869_v54 = vmax.f32 %v845_v51, %v866_v52  ;;  %v871_v55 = vmax.f32 %v847_v50, %v868_v53 }
 0x1d5   :  { %v3241_v56 = vmul.f32 %v874_v44, %v869_v54  ;;  %v3245_v57 = vmul.f32 %v876_v45, %v871_v55 }
 0x1d7   :  { %1035 = vrot.lane.b32.xlu1 %v3245_v57, %s2807_s27  ;;  %v2729_v58 = vpack.i.bf16 %v3245_v57, %v3241_v56  ;;  %v2744_v60 = vpack.i.bf16 %v3221_v0, %v3241_v56 }
 0x1d9   :  { %2730 = vrot.lane.b32.xlu0 %v2729_v58, %s2806_s26  ;;  %2725 = vrot.lane.b32.xlu2 %v2729_v58, %s2805_s25 }
 0x1df   :  { %2745 = vrot.lane.b32.xlu1 %v2744_v60, %s2809_s28 }
 0x1e1   :  { %2735 = vrot.lane.b32.xlu0 %v2744_v60, %s2807_s27  ;;  %885 = vrot.lane.b32.xlu2 %v3221_v0, %s2806_s26 }
 0x1e7   :  { %1334 = vrot.lane.b32.xlu1 %v3245_v57, %s2810_s29 }
 0x1e9   :  { %1112 = vrot.lane.b32.xlu0 %v3245_v57, %s2808_s0  ;;  %2740 = vrot.lane.b32.xlu2 %v2744_v60, %s2808_s0 }
 0x1ef   :  { %2760 = vrot.lane.b32.xlu1 %v2744_v60, %s2812_s15 }
 0x1f1   :  { %2750 = vrot.lane.b32.xlu0 %v2744_v60, %s2810_s29  ;;  %1257 = vrot.lane.b32.xlu2 %v3245_v57, %s2809_s28 }
 0x1f9   :  { %1411 = vrot.lane.b32.xlu0 %v3245_v57, %s2811_s30  ;;  %2755 = vrot.lane.b32.xlu2 %v2744_v60, %s2811_s30 }
 0x201   :  { %1564 = vperm.xlu0 %2723, %v1561_v61   ;;  %1488 = vrot.lane.b32.xlu2 %v3245_v57, %s2812_s15 }
 0x233   :  { %v2726_v62 = vpop.permute.xlu2 %2725 }
 0x234   :  { %v2728_v63 = vunpack.i.h.bf16 %v2726_v62  ;;  %v2727_v3 = vunpack.i.l.bf16 %v2726_v62 }
 0x236   :  { %v901_v8 = vsel %vm87_vm1, %v2728_v63, %v2727_v3 }
 0x237   :  { %923 = vmatpush.msra.mxu3 %v901_v8  ;;  %v2551_v8 = vld [vmem:[%s3784_s3 + $0x38] sm:$0xff] }
 0x238   :  { %2525 = vmatmul.msk.f32.vlgmr.msra.gmra.mxu3 %vm904_vm9, %v2524_v5 }
 0x23b   :  { %v886_v9 = vpop.permute.xlu2 %885 }
 0x241   :  { %v896_v10 = vpop.permute.xlu1 %895 }
 0x242   :  { %v899_v11 = vsel %vm87_vm1, %v896_v10, %v2728_v63  ;;  %v900_v12 = vsel %vm87_vm1, %v2727_v3, %v896_v10  ;;  %v2547_v3 = vld [vmem:[%s3784_s3 + $0x30] sm:$0xff] }
 0x243   :  { %943 = vmatpush.msrb.mxu0 %v900_v12  ;;  %963 = vmatpush.msra.mxu1 %v899_v11  ;;  %v2741_v59 = vpop.permute.xlu2 %2740 }
 0x244   :  { %2526 = vmatmul.msk.f32.vlgmr.msrb.gmra.mxu0 %vm904_vm9, %v2524_v5  ;;  %2527 = vmatmul.msk.f32.vlgmr.msra.gmra.mxu1 %vm904_vm9, %v2524_v5  ;;  %v2743_v18 = vunpack.i.h.bf16 %v2741_v59  ;;  %v2742_v19 = vunpack.i.l.bf16 %v2741_v59 }
 0x246   :  { %v1115_v35 = vsel %vm322_vm4, %v2742_v19, %v2743_v18 }
 0x249   :  { %v1036_v13 = vpop.permute.xlu1 %1035 }
 0x24b   :  { %v2731_v14 = vpop.permute.xlu0 %2730  ;;  %v1258_v27 = vpop.permute.xlu2 %1257 }
 0x24c   :  { %v2733_v15 = vunpack.i.h.bf16 %v2731_v14  ;;  %v2732_v16 = vunpack.i.l.bf16 %v2731_v14 }
 0x24e   :  { %v891_v21 = vsel %vm67_vm2, %v2733_v15, %v2732_v16  ;;  %v890_v22 = vsel %vm67_vm2, %v2732_v16, %v886_v9  ;;  %v889_v23 = vsel %vm67_vm2, %v886_v9, %v2733_v15  ;;  %v2555_v9 = vld [vmem:[%s3784_s3 + $0x40] sm:$0xff] }
 0x24f   :  { %986 = vmatpush.msra.mxu2 %v891_v21  ;;  %1006 = vmatpush.msrb.mxu3 %v890_v22 }
 0x250   :  { %1026 = vmatpush.msra.mxu0 %v889_v23  ;;  %2528 = vmatmul.msk.f32.vlgmr.msra.gmra.mxu2 %vm904_vm9, %v892_v20 }
 0x251   :  { %2529 = vmatmul.msk.f32.vlgmr.msrb.gmra.mxu3 %vm904_vm9, %v892_v20  ;;  %2530 = vmatmul.msk.f32.vlgmr.msra.gmra.mxu0 %vm904_vm9, %v892_v20  ;;  %v2746_v24 = vpop.permute.xlu1 %2745 }
 0x252   :  { %v2748_v30 = vunpack.i.h.bf16 %v2746_v24  ;;  %v2747_v34 = vunpack.i.l.bf16 %v2746_v24 }
 0x253   :  { %v2736_v25 = vpop.permute.xlu0 %2735  ;;  %v2756_v41 = vpop.permute.xlu2 %2755 }
 0x254   :  { %v2738_v28 = vunpack.i.h.bf16 %v2736_v25  ;;  %v2737_v29 = vunpack.i.l.bf16 %v2736_v25  ;;  %v1259_v4 = vsel %vm477_vm6, %v2748_v30, %v1258_v27  ;;  %v1260_v40 = vsel %vm477_vm6, %v2747_v34, %v2748_v30 }
 0x255   :  { %v1261_v43 = vsel %vm477_vm6, %v1258_v27, %v2747_v34  ;;  %v2758_v6 = vunpack.i.h.bf16 %v2756_v41  ;;  %v2757_v46 = vunpack.i.l.bf16 %v2756_v41 }
 0x256   :  { %v1039_v31 = vsel %vm235_vm0, %v1036_v13, %v2737_v29  ;;  %v1038_v32 = vsel %vm235_vm0, %v2737_v29, %v2738_v28  ;;  %v1037_v33 = vsel %vm235_vm0, %v2738_v28, %v1036_v13 }
 0x257   :  { %1060 = vmatpush.msrb.mxu1 %v1039_v31  ;;  %1080 = vmatpush.msrb.mxu2 %v1038_v32 }
 0x258   :  { %1100 = vmatpush.msra.mxu3 %v1037_v33  ;;  %2532 = vmatmul.msk.f32.vlgmr.msrb.gmra.mxu1 %vm904_vm9, %v2531_v26 }
 0x259   :  { %2533 = vmatmul.msk.f32.vlgmr.msrb.gmra.mxu2 %vm904_vm9, %v2531_v26  ;;  %2534 = vmatmul.msk.f32.vlgmr.msra.gmra.mxu3 %vm904_vm9, %v2531_v26  ;;  %v1335_v36 = vpop.permute.xlu1 %1334 }
 0x25a   :  { %1157 = vmatpush.msra.mxu1 %v1115_v35  ;;  %1205 = vmatpush.msrb.mxu3 %v3241_v56  ;;  %v2543_v56 = vld [vmem:[%s3784_s3 + $0x28] sm:$0xff] }
 0x25b   :  { %v1113_v37 = vpop.permute.xlu0 %1112  ;;  %v1489_v62 = vpop.permute.xlu2 %1488 }
 0x25c   :  { %1245 = vmatpush.msrb.mxu1 %v3245_v57  ;;  %1302 = vmatpush.msra.mxu3 %v1259_v4  ;;  %v1114_v7 = vsel %vm322_vm4, %v2743_v18, %v1113_v37  ;;  %v1116_v38 = vsel %vm322_vm4, %v1113_v37, %v2742_v19 }
 0x25d   :  { %1137 = vmatpush.msrb.mxu0 %v1116_v38  ;;  %1177 = vmatpush.msra.mxu2 %v1114_v7 }
 0x25e   :  { %2536 = vmatmul.msk.f32.vlgmr.msrb.gmra.mxu0 %vm904_vm9, %v2535_v2 }
 0x25f   :  { %1282 = vmatpush.msrb.mxu2 %v1260_v40  ;;  %1225 = vmatpush.msra.mxu0 %v3221_v0  ;;  %v1414_v0 = vsel %vm651_vm7, %v2757_v46, %v2758_v6 }
 0x260   :  { %2537 = vmatmul.msk.f32.vlgmr.msra.gmra.mxu1 %vm904_vm9, %v2535_v2 }
 0x261   :  { %1322 = vmatpush.msrb.mxu0 %v1261_v43  ;;  %2538 = vmatmul.msk.f32.vlgmr.msra.gmra.mxu2 %vm904_vm9, %v2535_v2  ;;  %v2761_v47 = vpop.permute.xlu1 %2760 }
 0x262   :  { %2540 = vmatmul.msk.f32.vlgmr.msrb.gmra.mxu3 %vm904_vm9, %v2539_v42  ;;  %v2763_v51 = vunpack.i.h.bf16 %v2761_v47  ;;  %v2762_v52 = vunpack.i.l.bf16 %v2761_v47 }
 0x263   :  { %v2751_v48 = vpop.permute.xlu0 %2750 }
 0x264   :  { %v2753_v49 = vunpack.i.h.bf16 %v2751_v48  ;;  %v2752_v50 = vunpack.i.l.bf16 %v2751_v48  ;;  %v1491_v57 = vsel %vm738_vm8, %v2762_v52, %v2763_v51  ;;  %v1490_v63 = vsel %vm738_vm8, %v2763_v51, %v1489_v62 }
 0x265   :  { %v1492_v5 = vsel %vm738_vm8, %v1489_v62, %v2762_v52 }
 0x266   :  { %2541 = vmatmul.msk.f32.vlgmr.msra.gmra.mxu0 %vm904_vm9, %v2539_v42  ;;  %v1337_v53 = vsel %vm564_vm5, %v2752_v50, %v2753_v49  ;;  %v1336_v54 = vsel %vm564_vm5, %v2753_v49, %v1335_v36  ;;  %v1338_v55 = vsel %vm564_vm5, %v1335_v36, %v2752_v50 }
 0x267   :  { %1436 = vmatpush.msra.mxu0 %v1414_v0  ;;  %1359 = vmatpush.msra.mxu1 %v1337_v53 }
 0x268   :  { %1379 = vmatpush.msra.mxu2 %v1336_v54  ;;  %1399 = vmatpush.msrb.mxu3 %v1338_v55 }
 0x269   :  { %2542 = vmatmul.msk.f32.vlgmr.msrb.gmra.mxu1 %vm904_vm9, %v2539_v42  ;;  %2544 = vmatmul.msk.f32.vlgmr.msrb.gmra.mxu2 %vm904_vm9, %v2543_v56 }
 0x26a   :  { %2545 = vmatmul.msk.f32.vlgmr.msra.gmra.mxu3 %vm904_vm9, %v2543_v56 }
 0x26b   :  { %1513 = vmatpush.msra.mxu3 %v1491_v57  ;;  %v1412_v58 = vpop.permute.xlu0 %1411 }
 0x26c   :  { %v1413_v60 = vsel %vm651_vm7, %v2758_v6, %v1412_v58  ;;  %v1415_v61 = vsel %vm651_vm7, %v1412_v58, %v2757_v46 }
 0x26d   :  { %1456 = vmatpush.msrb.mxu1 %v1413_v60  ;;  %1476 = vmatpush.msrb.mxu2 %v1415_v61 }
 0x26e   :  { %2546 = vmatmul.msk.f32.vlgmr.msrb.gmra.mxu0 %vm904_vm9, %v2543_v56 }
 0x26f   :  { %1533 = vmatpush.msrb.mxu0 %v1490_v63 }
 0x271   :  { %2548 = vmatmul.msk.f32.vlgmr.msra.gmra.mxu1 %vm904_vm9, %v2547_v3  ;;  %2549 = vmatmul.msk.f32.vlgmr.msra.gmra.mxu2 %vm904_vm9, %v2547_v3 }
 0x272   :  { %2550 = vmatmul.msk.f32.vlgmr.msrb.gmra.mxu3 %vm904_vm9, %v2547_v3  ;;  %1553 = vmatpush.msra.mxu1 %v1492_v5 }
 0x273   :  { %v1565_v54 = vpop.permute.xlu0 %1564 }
 0x276   :  { %2552 = vmatmul.msk.f32.vlgmr.msra.gmra.mxu0 %vm904_vm9, %v2551_v8 }
 0x279   :  { %2553 = vmatmul.msk.f32.vlgmr.msrb.gmra.mxu1 %vm904_vm9, %v2551_v8  ;;  %2554 = vmatmul.msk.f32.vlgmr.msrb.gmra.mxu2 %vm904_vm9, %v2551_v8 }
 0x27a   :  { %2556 = vmatmul.msk.f32.vlgmr.msra.gmra.mxu3 %vm904_vm9, %v2555_v9 }
 0x27e   :  { %2557 = vmatmul.msk.f32.vlgmr.msrb.gmra.mxu0 %vm904_vm9, %v2555_v9 }
 0x281   :  { %2558 = vmatmul.msk.f32.vlgmr.msra.gmra.mxu1 %vm904_vm9, %v2555_v9 }
 0x2bb   :  { %v925_v11 = vpop.f32.mrf.mxu3 }
 0x2c1   :  { %v945_v10 = vpop.f32.mrf.mxu0  ;;  %v965_v12 = vpop.f32.mrf.mxu1 }
 0x2ce   :  { %v1028_v13 = vpop.f32.mrf.mxu0 }
 0x2cf   :  { %v1029_v32 = vadd.f32 %v1028_v13, %v965_v12 }
 0x2d3   :  { %v988_v59 = vpop.f32.mrf.mxu2 }
 0x2d4   :  { %v1008_v14 = vpop.f32.mrf.mxu3  ;;  %v989_v18 = vadd.f32 %v988_v59, %v925_v11  ;;  %v3399_v59 = vld [vmem:[%s3785_s9] sm:$0x7] }
 0x2d5   :  { %v1062_v15 = vpop.f32.mrf.mxu1  ;;  %v1009_v28 = vadd.f32 %v1008_v14, %v945_v10 }
 0x2d6   :  { %v1105_v33 = vadd.f32 %v1062_v15, %v989_v18  ;;  %v1615_v15 = vperm.slane %v3399_v59, 1 }
 0x2db   :  { %v1139_v16 = vpop.f32.mrf.mxu0 }
 0x2dc   :  { %v1082_v20 = vpop.f32.mrf.mxu2  ;;  %v1102_v21 = vpop.f32.mrf.mxu3  ;;  %v1182_v36 = vadd.f32 %v1139_v16, %v1105_v33 }
 0x2dd   :  { %v1159_v22 = vpop.f32.mrf.mxu1  ;;  %v1106_v19 = vadd.f32 %v1082_v20, %v1009_v28  ;;  %v1107_v35 = vadd.f32 %v1102_v21, %v1029_v32 }
 0x2df   :  { %v1183_v34 = vadd.f32 %v1159_v22, %v1106_v19 }
 0x2e3   :  { %v1227_v23 = vpop.f32.mrf.mxu0 }
 0x2e4   :  { %v1179_v24 = vpop.f32.mrf.mxu2  ;;  %v1251_v4 = vadd.f32 %v1227_v23, %v1183_v34  ;;  %v1614_v23 = vperm.slane %v3399_v59, 0 }
 0x2e5   :  { %v1207_v25 = vpop.f32.mrf.mxu3  ;;  %v1184_v37 = vadd.f32 %v1179_v24, %v1107_v35  ;;  %v1616_v24 = vperm.slane %v3399_v59, 2  ;;  %v2397_v59 = vld [vmem:[%s3788_s12 + $0xe8] sm:$0xff] }
 0x2e6   :  { %v1247_v27 = vpop.f32.mrf.mxu1  ;;  %v1250_v7 = vadd.f32 %v1207_v25, %v1182_v36 }
 0x2e7   :  { %v1252_v46 = vadd.f32 %v1247_v27, %v1184_v37 }
 0x2eb   :  { %v1324_v29 = vpop.f32.mrf.mxu0 }
 0x2ec   :  { %v1284_v26 = vpop.f32.mrf.mxu2  ;;  %v1329_v47 = vadd.f32 %v1324_v29, %v1252_v46 }
 0x2ed   :  { %v1304_v30 = vpop.f32.mrf.mxu3  ;;  %v1327_v42 = vadd.f32 %v1284_v26, %v1250_v7 }
 0x2ee   :  { %v1361_v31 = vpop.f32.mrf.mxu1  ;;  %v1328_v38 = vadd.f32 %v1304_v30, %v1251_v4 }
 0x2ef   :  { %v1404_v48 = vadd.f32 %v1361_v31, %v1327_v42 }
 0x2f3   :  { %v1438_v2 = vpop.f32.mrf.mxu0 }
 0x2f4   :  { %v1381_v40 = vpop.f32.mrf.mxu2  ;;  %v1481_v0 = vadd.f32 %v1438_v2, %v1404_v48 }
 0x2f5   :  { %v1401_v41 = vpop.f32.mrf.mxu3  ;;  %v1405_v43 = vadd.f32 %v1381_v40, %v1328_v38 }
 0x2f6   :  { %v1458_v6 = vpop.f32.mrf.mxu1  ;;  %v1406_v50 = vadd.f32 %v1401_v41, %v1329_v47 }
 0x2f7   :  { %v1482_v49 = vadd.f32 %v1458_v6, %v1405_v43 }
 0x2fb   :  { %v1535_v51 = vpop.f32.mrf.mxu0 }
 0x2fc   :  { %v1478_v52 = vpop.f32.mrf.mxu2  ;;  %v1559_v53 = vadd.f32 %v1535_v51, %v1482_v49  ;;  %v2559_v51 = vld [vmem:[%s3786_s5 + $0x8] sm:$0xff] }
 0x2fd   :  { %v1483_v55 = vadd.f32 %v1478_v52, %v1406_v50  ;;  %v1515_v56 = vpop.f32.mrf.mxu3 }
 0x2fe   :  { %v1558_v57 = vadd.f32 %v1515_v56, %v1481_v0  ;;  %v1568_v58 = vadd.f32 %v1565_v54, %v1559_v53  ;;  %v1555_v60 = vpop.f32.mrf.mxu1 }
 0x2ff   :  { %v1560_v61 = vadd.f32 %v1555_v60, %v1483_v55 }
 0x300   :  { %v1567_v62 = vadd.f32 %v1565_v54, %v1558_v57  ;;  %v1571_v63 = vmax.f32 %v1568_v58, 0.0 }
 0x301   :  { %v1569_v3 = vadd.f32 %v1565_v54, %v1560_v61 }
 0x302   :  { %v1570_v5 = vmax.f32 %v1567_v62, 0.0  ;;  %v1574_v8 = vmul.f32 %v1571_v63, %v875_v39 }
 0x303   :  { %v1572_v9 = vmax.f32 %v1569_v3, 0.0 }
 0x304   :  { %v1573_v10 = vmul.f32 %v1570_v5, %v874_v44  ;;  %1578 = vrot.lane.b32.xlu2 %v1574_v8, %s2808_s0  ;;  %v1632_v5 = vld [vmem:[%s3786_s5] sm:$0xff] }
 0x305   :  { %v1575_v11 = vmul.f32 %v1572_v9, %v876_v45  ;;  %v2566_v9 = vld [vmem:[%s3786_s5 + $0x10] sm:$0xff] }
 0x306   :  { %1576 = vrot.lane.b32.xlu1 %v1573_v10, %s2808_s0 }
 0x307   :  { %1580 = vrot.lane.b32.xlu0 %v1575_v11, %s2808_s0 }
 0x30c   :  { %1590 = vrot.lane.b32.xlu2 %v1574_v8, %s2805_s25 }
 0x30e   :  { %1588 = vrot.lane.b32.xlu1 %v1573_v10, %s2805_s25 }
 0x30f   :  { %1592 = vrot.lane.b32.xlu0 %v1575_v11, %s2805_s25 }
 0x314   :  { %1599 = vrot.lane.b32.xlu2 %v1574_v8, %s2806_s26 }
 0x316   :  { %1597 = vrot.lane.b32.xlu1 %v1573_v10, %s2806_s26 }
 0x317   :  { %1601 = vrot.lane.b32.xlu0 %v1575_v11, %s2806_s26 }
 0x35e   :  { %v1579_v39 = vpop.permute.xlu2 %1578 }
 0x366   :  { %v1591_v45 = vpop.permute.xlu2 %1590 }
 0x36e   :  { %v1600_v16 = vpop.permute.xlu2 %1599 }
 0x378   :  { %v1577_v44 = vpop.permute.xlu1 %1576 }
 0x379   :  { %v1581_v1 = vpop.permute.xlu0 %1580  ;;  %v1583_v14 = vsel %vm322_vm4, %v1577_v44, %v1579_v39 }
 0x37a   :  { %v1582_v20 = vsel %vm322_vm4, %v1579_v39, %v1581_v1  ;;  %v1584_v21 = vsel %vm322_vm4, %v1581_v1, %v1577_v44  ;;  %v1586_v25 = vmax.f32 %v1574_v8, %v1583_v14 }
 0x37b   :  { %v1585_v32 = vmax.f32 %v1573_v10, %v1584_v21  ;;  %v1587_v33 = vmax.f32 %v1575_v11, %v1582_v20  ;;  %v2570_v20 = vld [vmem:[%s3786_s5 + $0x18] sm:$0xff] }
 0x380   :  { %v1589_v12 = vpop.permute.xlu1 %1588 }
 0x381   :  { %v1593_v13 = vpop.permute.xlu0 %1592  ;;  %v1595_v27 = vsel %vm87_vm1, %v1589_v12, %v1591_v45 }
 0x382   :  { %v1594_v28 = vsel %vm87_vm1, %v1591_v45, %v1593_v13  ;;  %v1596_v19 = vsel %vm87_vm1, %v1593_v13, %v1589_v12 }
 0x388   :  { %v1598_v22 = vpop.permute.xlu1 %1597 }
 0x389   :  { %v1604_v29 = vsel %vm67_vm2, %v1598_v22, %v1600_v16  ;;  %v1602_v18 = vpop.permute.xlu0 %1601 }
 0x38a   :  { %v1607_v26 = vmax.f32 %v1595_v27, %v1604_v29  ;;  %v1603_v30 = vsel %vm67_vm2, %v1600_v16, %v1602_v18  ;;  %v1605_v31 = vsel %vm67_vm2, %v1602_v18, %v1598_v22  ;;  %v2300_v18 = vld [vmem:[%s3787_s6] sm:$0xff] }
 0x38b   :  { %v1606_v34 = vmax.f32 %v1596_v19, %v1605_v31  ;;  %v1608_v35 = vmax.f32 %v1594_v28, %v1603_v30  ;;  %v2574_v31 = vld [vmem:[%s3786_s5 + $0x20] sm:$0xff] }
 0x38c   :  { %v1610_v36 = vmax.f32 %v1586_v25, %v1607_v26 }
 0x38d   :  { %v1609_v4 = vmax.f32 %v1585_v32, %v1606_v34  ;;  %v1611_v37 = vmax.f32 %v1587_v33, %v1608_v35 }
 0x38e   :  { %v3424_v2 = vmul.f32 %v1615_v15, %v1610_v36 }
 0x38f   :  { %v1620_v7 = vmul.f32 %v1614_v23, %v1609_v4  ;;  %v3430_v38 = vmul.f32 %v1616_v24, %v1611_v37 }
 0x391   :  { %1637 = vrot.lane.b32.xlu2 %v3430_v38, %s2805_s25  ;;  %v2769_v40 = vpack.i.bf16 %v3424_v2, %v1620_v7  ;;  %v2779_v41 = vpack.i.bf16 %v3430_v38, %v1620_v7 }
 0x393   :  { %2770 = vrot.lane.b32.xlu0 %v2769_v40, %s2806_s26  ;;  %2765 = vrot.lane.b32.xlu1 %v2769_v40, %s2805_s25 }
 0x399   :  { %2775 = vrot.lane.b32.xlu2 %v2769_v40, %s2807_s27 }
 0x39b   :  { %1774 = vrot.lane.b32.xlu0 %v3430_v38, %s2807_s27  ;;  %1627 = vrot.lane.b32.xlu1 %v3430_v38, %s2806_s26 }
 0x3a1   :  { %1849 = vrot.lane.b32.xlu2 %v3424_v2, %s2808_s0 }
 0x3a3   :  { %2785 = vrot.lane.b32.xlu0 %v2769_v40, %s2809_s28  ;;  %2780 = vrot.lane.b32.xlu1 %v2779_v41, %s2808_s0 }
 0x3a9   :  { %2790 = vrot.lane.b32.xlu2 %v2769_v40, %s2810_s29 }
 0x3ab   :  { %2073 = vrot.lane.b32.xlu0 %v3430_v38, %s2810_s29  ;;  %1996 = vrot.lane.b32.xlu1 %v3430_v38, %s2809_s28 }
 0x3b1   :  { %2150 = vrot.lane.b32.xlu2 %v3430_v38, %s2811_s30 }
 0x3b3   :  { %2800 = vrot.lane.b32.xlu0 %v2769_v40, %s2812_s15  ;;  %2795 = vrot.lane.b32.xlu1 %v2769_v40, %s2811_s30 }
 0x3b9   :  { %2303 = vperm.xlu2 %2804, %v2300_v18  }
 0x3bb   :  { %2227 = vrot.lane.b32.xlu1 %v3430_v38, %s2812_s15 }
 0x3eb   :  { %v1638_v42 = vpop.permute.xlu2 %1637 }
 0x3f3   :  { %v2776_v43 = vpop.permute.xlu2 %2775 }
 0x3f4   :  { %v2778_v55 = vunpack.i.h.bf16 %v2776_v43  ;;  %v2777_v56 = vunpack.i.l.bf16 %v2776_v43  ;;  %v2582_v43 = vld [vmem:[%s3786_s5 + $0x30] sm:$0xff] }
 0x3f6   :  { %v1777_v8 = vsel %vm235_vm0, %v2777_v56, %v2778_v55 }
 0x3fb   :  { %v1850_v57 = vpop.permute.xlu2 %1849 }
 0x403   :  { %v2791_v39 = vpop.permute.xlu2 %2790 }
 0x404   :  { %v2793_v21 = vunpack.i.h.bf16 %v2791_v39  ;;  %v2792_v22 = vunpack.i.l.bf16 %v2791_v39 }
 0x405   :  { %v2771_v6 = vpop.permute.xlu0 %2770  ;;  %v2766_v46 = vpop.permute.xlu1 %2765 }
 0x406   :  { %v2773_v47 = vunpack.i.h.bf16 %v2771_v6  ;;  %v2772_v48 = vunpack.i.l.bf16 %v2771_v6  ;;  %v2768_v49 = vunpack.i.h.bf16 %v2766_v46  ;;  %v2767_v50 = vunpack.i.l.bf16 %v2766_v46 }
 0x407   :  { %v2076_v27 = vsel %vm564_vm5, %v2792_v22, %v2793_v21 }
 0x408   :  { %v1641_v0 = vsel %vm87_vm1, %v1638_v42, %v2767_v50  ;;  %v1640_v52 = vsel %vm87_vm1, %v2767_v50, %v2768_v49  ;;  %v1639_v53 = vsel %vm87_vm1, %v2768_v49, %v1638_v42  ;;  %v1630_v54 = vsel %vm67_vm2, %v2772_v48, %v2773_v47  ;;  %v2590_v49 = vld [vmem:[%s3786_s5 + $0x40] sm:$0xff] }
 0x409   :  { %1662 = vmatpush.msra.mxu2 %v1641_v0  ;;  %1682 = vmatpush.msrb.mxu3 %v1640_v52 }
 0x40a   :  { %1702 = vmatpush.msra.mxu0 %v1639_v53  ;;  %2560 = vmatmul.msk.f32.vlgmr.msra.gmra.mxu2 %vm904_vm9, %v2559_v51 }
 0x40b   :  { %2561 = vmatmul.msk.f32.vlgmr.msrb.gmra.mxu3 %vm904_vm9, %v2559_v51  ;;  %1745 = vmatpush.msrb.mxu2 %v1630_v54 }
 0x40c   :  { %2562 = vmatmul.msk.f32.vlgmr.msra.gmra.mxu0 %vm904_vm9, %v2559_v51 }
 0x40d   :  { %v1775_v58 = vpop.permute.xlu0 %1774  ;;  %v1628_v60 = vpop.permute.xlu1 %1627 }
 0x40e   :  { %v1776_v61 = vsel %vm235_vm0, %v2778_v55, %v1775_v58  ;;  %v1778_v62 = vsel %vm235_vm0, %v1775_v58, %v2777_v56  ;;  %v1629_v63 = vsel %vm67_vm2, %v2773_v47, %v1628_v60  ;;  %v1631_v3 = vsel %vm67_vm2, %v1628_v60, %v2772_v48  ;;  %v2586_v48 = vld [vmem:[%s3786_s5 + $0x38] sm:$0xff] }
 0x40f   :  { %1725 = vmatpush.msrb.mxu1 %v1631_v3  ;;  %1765 = vmatpush.msra.mxu3 %v1629_v63 }
 0x410   :  { %1799 = vmatpush.msrb.mxu0 %v1778_v62  ;;  %1839 = vmatpush.msra.mxu2 %v1776_v61 }
 0x411   :  { %2563 = vmatmul.msk.f32.vlgmr.msrb.gmra.mxu1 %vm904_vm9, %v1632_v5 }
 0x412   :  { %1819 = vmatpush.msra.mxu1 %v1777_v8  ;;  %2564 = vmatmul.msk.f32.vlgmr.msrb.gmra.mxu2 %vm904_vm9, %v1632_v5 }
 0x413   :  { %2565 = vmatmul.msk.f32.vlgmr.msra.gmra.mxu3 %vm904_vm9, %v1632_v5  ;;  %1944 = vmatpush.msrb.mxu2 %v1620_v7  ;;  %v2151_v7 = vpop.permute.xlu2 %2150 }
 0x414   :  { %2567 = vmatmul.msk.f32.vlgmr.msrb.gmra.mxu0 %vm904_vm9, %v2566_v9 }
 0x415   :  { %v2786_v10 = vpop.permute.xlu0 %2785  ;;  %v2781_v11 = vpop.permute.xlu1 %2780 }
 0x416   :  { %v2788_v44 = vunpack.i.h.bf16 %v2786_v10  ;;  %v2787_v1 = vunpack.i.l.bf16 %v2786_v10  ;;  %v2783_v45 = vunpack.i.h.bf16 %v2781_v11  ;;  %v2782_v12 = vunpack.i.l.bf16 %v2781_v11 }
 0x418   :  { %v1855_v13 = vsel %vm322_vm4, %v2783_v45, %v2782_v12  ;;  %v1854_v14 = vsel %vm322_vm4, %v2782_v12, %v1850_v57  ;;  %v1853_v16 = vsel %vm322_vm4, %v1850_v57, %v2783_v45  ;;  %v1999_v25 = vsel %vm477_vm6, %v2787_v1, %v2788_v44 }
 0x419   :  { %2568 = vmatmul.msk.f32.vlgmr.msra.gmra.mxu1 %vm904_vm9, %v2566_v9  ;;  %1876 = vmatpush.msrb.mxu3 %v1855_v13 }
 0x41a   :  { %1896 = vmatpush.msra.mxu0 %v1854_v14  ;;  %1916 = vmatpush.msrb.mxu1 %v1853_v16 }
 0x41b   :  { %2569 = vmatmul.msk.f32.vlgmr.msra.gmra.mxu2 %vm904_vm9, %v2566_v9  ;;  %2571 = vmatmul.msk.f32.vlgmr.msrb.gmra.mxu3 %vm904_vm9, %v2570_v20 }
 0x41c   :  { %1964 = vmatpush.msra.mxu3 %v3424_v2  ;;  %1984 = vmatpush.msrb.mxu0 %v3430_v38  ;;  %v2578_v2 = vld [vmem:[%s3786_s5 + $0x28] sm:$0xff] }
 0x41d   :  { %2021 = vmatpush.msra.mxu1 %v1999_v25  ;;  %2572 = vmatmul.msk.f32.vlgmr.msra.gmra.mxu0 %vm904_vm9, %v2570_v20  ;;  %v2074_v28 = vpop.permute.xlu0 %2073  ;;  %v1997_v29 = vpop.permute.xlu1 %1996 }
 0x41e   :  { %2098 = vmatpush.msra.mxu0 %v2076_v27  ;;  %v1998_v19 = vsel %vm477_vm6, %v2788_v44, %v1997_v29  ;;  %v2000_v26 = vsel %vm477_vm6, %v1997_v29, %v2787_v1  ;;  %v2075_v30 = vsel %vm564_vm5, %v2793_v21, %v2074_v28  ;;  %v2077_v32 = vsel %vm564_vm5, %v2074_v28, %v2792_v22 }
 0x41f   :  { %2041 = vmatpush.msra.mxu2 %v1998_v19  ;;  %2061 = vmatpush.msrb.mxu3 %v2000_v26 }
 0x421   :  { %2573 = vmatmul.msk.f32.vlgmr.msrb.gmra.mxu1 %vm904_vm9, %v2570_v20 }
 0x422   :  { %2118 = vmatpush.msrb.mxu1 %v2075_v30 }
 0x423   :  { %2575 = vmatmul.msk.f32.vlgmr.msrb.gmra.mxu2 %vm904_vm9, %v2574_v31  ;;  %2576 = vmatmul.msk.f32.vlgmr.msra.gmra.mxu3 %vm904_vm9, %v2574_v31 }
 0x424   :  { %2138 = vmatpush.msrb.mxu2 %v2077_v32 }
 0x425   :  { %2577 = vmatmul.msk.f32.vlgmr.msrb.gmra.mxu0 %vm904_vm9, %v2574_v31  ;;  %v2801_v33 = vpop.permute.xlu0 %2800  ;;  %v2796_v34 = vpop.permute.xlu1 %2795 }
 0x426   :  { %v2803_v35 = vunpack.i.h.bf16 %v2801_v33  ;;  %v2802_v36 = vunpack.i.l.bf16 %v2801_v33  ;;  %v2798_v4 = vunpack.i.h.bf16 %v2796_v34  ;;  %v2797_v37 = vunpack.i.l.bf16 %v2796_v34 }
 0x428   :  { %v2153_v38 = vsel %vm651_vm7, %v2797_v37, %v2798_v4  ;;  %v2152_v40 = vsel %vm651_vm7, %v2798_v4, %v2151_v7  ;;  %v2154_v41 = vsel %vm651_vm7, %v2151_v7, %v2797_v37  ;;  %v2230_v42 = vsel %vm738_vm8, %v2802_v36, %v2803_v35  ;;  %v2304_v37 = vpop.permute.xlu2 %2303 }
 0x429   :  { %2579 = vmatmul.msk.f32.vlgmr.msra.gmra.mxu1 %vm904_vm9, %v2578_v2  ;;  %2175 = vmatpush.msra.mxu3 %v2153_v38 }
 0x42a   :  { %2195 = vmatpush.msrb.mxu0 %v2152_v40  ;;  %2215 = vmatpush.msra.mxu1 %v2154_v41 }
 0x42b   :  { %2580 = vmatmul.msk.f32.vlgmr.msra.gmra.mxu2 %vm904_vm9, %v2578_v2  ;;  %2581 = vmatmul.msk.f32.vlgmr.msrb.gmra.mxu3 %vm904_vm9, %v2578_v2 }
 0x42c   :  { %2252 = vmatpush.msra.mxu2 %v2230_v42 }
 0x42d   :  { %2583 = vmatmul.msk.f32.vlgmr.msra.gmra.mxu0 %vm904_vm9, %v2582_v43  ;;  %v2228_v6 = vpop.permute.xlu1 %2227 }
 0x42e   :  { %v2229_v46 = vsel %vm738_vm8, %v2803_v35, %v2228_v6  ;;  %v2231_v47 = vsel %vm738_vm8, %v2228_v6, %v2802_v36 }
 0x42f   :  { %2272 = vmatpush.msrb.mxu3 %v2229_v46  ;;  %2292 = vmatpush.msra.mxu0 %v2231_v47 }
 0x431   :  { %2584 = vmatmul.msk.f32.vlgmr.msrb.gmra.mxu1 %vm904_vm9, %v2582_v43 }
 0x433   :  { %2585 = vmatmul.msk.f32.vlgmr.msrb.gmra.mxu2 %vm904_vm9, %v2582_v43  ;;  %2587 = vmatmul.msk.f32.vlgmr.msra.gmra.mxu3 %vm904_vm9, %v2586_v48 }
 0x435   :  { %2588 = vmatmul.msk.f32.vlgmr.msrb.gmra.mxu0 %vm904_vm9, %v2586_v48 }
 0x439   :  { %2589 = vmatmul.msk.f32.vlgmr.msra.gmra.mxu1 %vm904_vm9, %v2586_v48 }
 0x43b   :  { %2591 = vmatmul.msk.f32.vlgmr.msra.gmra.mxu2 %vm904_vm9, %v2590_v49  ;;  %2592 = vmatmul.msk.f32.vlgmr.msrb.gmra.mxu3 %vm904_vm9, %v2590_v49 }
 0x43d   :  { %2593 = vmatmul.msk.f32.vlgmr.msra.gmra.mxu0 %vm904_vm9, %v2590_v49 }
 0x489   :  { %v1704_v50 = vpop.f32.mrf.mxu0 }
 0x48d   :  { %v1664_v51 = vpop.f32.mrf.mxu2 }
 0x48e   :  { %v1684_v0 = vpop.f32.mrf.mxu3  ;;  %v1727_v52 = vpop.f32.mrf.mxu1 }
 0x48f   :  { %v1728_v8 = vadd.f32 %v1727_v52, %v1664_v51  ;;  %v2398_v51 = vld [vmem:[%s3788_s12 + $0xf0] sm:$0xff]  ;;  %v2395_v52 = vld [vmem:[%s3788_s12 + $0xd8] sm:$0xff] }
 0x491   :  { %v1801_v53 = vpop.f32.mrf.mxu0 }
 0x492   :  { %v1844_v44 = vadd.f32 %v1801_v53, %v1728_v8  ;;  %v2415_v53 = vld [vmem:[%s3788_s12 + $0x178] sm:$0xff] }
 0x493   :  { %2456 = vmatpush.msra.mxu3 %v2415_v53  ;;  %v2411_v8 = vld [vmem:[%s3788_s12 + $0x158] sm:$0xff] }
 0x495   :  { %v1747_v54 = vpop.f32.mrf.mxu2 }
 0x496   :  { %v1767_v55 = vpop.f32.mrf.mxu3  ;;  %v1821_v56 = vpop.f32.mrf.mxu1  ;;  %v1748_v5 = vadd.f32 %v1747_v54, %v1684_v0  ;;  %v2383_v0 = vld [vmem:[%s3788_s12 + $0x78] sm:$0xff]  ;;  %v2382_v54 = vld [vmem:[%s3788_s12 + $0x70] sm:$0xff] }
 0x497   :  { %v1768_v13 = vadd.f32 %v1767_v55, %v1704_v50  ;;  %v2399_v50 = vld [vmem:[%s3788_s12 + $0xf8] sm:$0xff]  ;;  %2416 = vmatpush.msrb.mxu1 %v2383_v0  ;;  %v2394_v55 = vld [vmem:[%s3788_s12 + $0xd0] sm:$0xff] }
 0x498   :  { %v1845_v10 = vadd.f32 %v1821_v56, %v1748_v5  ;;  %2436 = vmatpush.msrb.mxu2 %v2399_v50  ;;  %v2414_v56 = vld [vmem:[%s3788_s12 + $0x170] sm:$0xff]  ;;  %v2391_v5 = vld [vmem:[%s3788_s12 + $0xb8] sm:$0xff] }
 0x499   :  { %2417 = vmatpush.msrb.mxu1 %v2382_v54  ;;  %2457 = vmatpush.msra.mxu3 %v2414_v56 }
 0x49a   :  { %v1898_v57 = vpop.f32.mrf.mxu0  ;;  %2437 = vmatpush.msrb.mxu2 %v2398_v51 }
 0x49b   :  { %v1922_v45 = vadd.f32 %v1898_v57, %v1845_v10  ;;  %v2381_v57 = vld [vmem:[%s3788_s12 + $0x68] sm:$0xff]  ;;  %v2390_v10 = vld [vmem:[%s3788_s12 + $0xb0] sm:$0xff] }
 0x49c   :  { %2438 = vmatpush.msrb.mxu2 %v2397_v59  ;;  %2418 = vmatpush.msrb.mxu1 %v2381_v57 }
 0x49e   :  { %v1841_v58 = vpop.f32.mrf.mxu2  ;;  %v1878_v60 = vpop.f32.mrf.mxu3 }
 0x49f   :  { %v1918_v61 = vpop.f32.mrf.mxu1  ;;  %v1921_v12 = vadd.f32 %v1878_v60, %v1844_v44  ;;  %v1846_v20 = vadd.f32 %v1841_v58, %v1768_v13  ;;  %v2413_v58 = vld [vmem:[%s3788_s12 + $0x168] sm:$0xff]  ;;  %v2408_v13 = vld [vmem:[%s3788_s12 + $0x140] sm:$0xff] }
 0x4a0   :  { %v2393_v60 = vld [vmem:[%s3788_s12 + $0xc8] sm:$0xff]  ;;  %2458 = vmatpush.msra.mxu3 %v2413_v58 }
 0x4a1   :  { %v1923_v29 = vadd.f32 %v1918_v61, %v1846_v20  ;;  %v2380_v61 = vld [vmem:[%s3788_s12 + $0x60] sm:$0xff]  ;;  %v2389_v44 = vld [vmem:[%s3788_s12 + $0xa8] sm:$0xff]  ;;  %v2407_v20 = vld [vmem:[%s3788_s12 + $0x138] sm:$0xff] }
 0x4a2   :  { %v1986_v62 = vpop.f32.mrf.mxu0  ;;  %2419 = vmatpush.msrb.mxu1 %v2380_v61 }
 0x4a3   :  { %v1991_v30 = vadd.f32 %v1986_v62, %v1923_v29  ;;  %v2392_v62 = vld [vmem:[%s3788_s12 + $0xc0] sm:$0xff]  ;;  %v2405_v29 = vld [vmem:[%s3788_s12 + $0x128] sm:$0xff] }
 0x4a6   :  { %v1946_v63 = vpop.f32.mrf.mxu2  ;;  %v1966_v3 = vpop.f32.mrf.mxu3 }
 0x4a7   :  { %v2023_v9 = vpop.f32.mrf.mxu1  ;;  %v1989_v14 = vadd.f32 %v1946_v63, %v1921_v12  ;;  %v1990_v16 = vadd.f32 %v1966_v3, %v1922_v45  ;;  %v2412_v63 = vld [vmem:[%s3788_s12 + $0x160] sm:$0xff]  ;;  %v2379_v3 = vld [vmem:[%s3788_s12 + $0x58] sm:$0xff] }
 0x4a8   :  { %2459 = vmatpush.msra.mxu3 %v2412_v63  ;;  %2420 = vmatpush.msrb.mxu1 %v2379_v3  ;;  %v2376_v45 = vld [vmem:[%s3788_s12 + $0x40] sm:$0xff] }
 0x4a9   :  { %v2066_v28 = vadd.f32 %v2023_v9, %v1989_v14  ;;  %v2378_v9 = vld [vmem:[%s3788_s12 + $0x50] sm:$0xff]  ;;  %v2388_v12 = vld [vmem:[%s3788_s12 + $0xa0] sm:$0xff]  ;;  %v2375_v14 = vld [vmem:[%s3788_s12 + $0x38] sm:$0xff] }
 0x4aa   :  { %v2100_v1 = vpop.f32.mrf.mxu0  ;;  %2460 = vmatpush.msra.mxu3 %v2411_v8  ;;  %2421 = vmatpush.msrb.mxu1 %v2378_v9 }
 0x4ab   :  { %v2143_v26 = vadd.f32 %v2100_v1, %v2066_v28  ;;  %v2409_v1 = vld [vmem:[%s3788_s12 + $0x148] sm:$0xff] }
 0x4ac   :  { %v2385_v28 = vld [vmem:[%s3788_s12 + $0x88] sm:$0xff] }
 0x4ae   :  { %v2043_v11 = vpop.f32.mrf.mxu2  ;;  %v2063_v39 = vpop.f32.mrf.mxu3 }
 0x4af   :  { %v2067_v21 = vadd.f32 %v2043_v11, %v1990_v16  ;;  %v2120_v22 = vpop.f32.mrf.mxu1  ;;  %v2068_v35 = vadd.f32 %v2063_v39, %v1991_v30  ;;  %v2410_v11 = vld [vmem:[%s3788_s12 + $0x150] sm:$0xff]  ;;  %v2377_v39 = vld [vmem:[%s3788_s12 + $0x48] sm:$0xff]  ;;  %v2387_v16 = vld [vmem:[%s3788_s12 + $0x98] sm:$0xff] }
 0x4b0   :  { %2461 = vmatpush.msra.mxu3 %v2410_v11  ;;  %2422 = vmatpush.msrb.mxu1 %v2377_v39  ;;  %v2371_v30 = vld [vmem:[%s3788_s12 + $0x18] sm:$0xff]  ;;  %v2362_v11 = vld [vmem:[%s3790_s11] sm:$0xff] }
 0x4b1   :  { %v2144_v18 = vadd.f32 %v2120_v22, %v2067_v21  ;;  %v2374_v21 = vld [vmem:[%s3788_s12 + $0x30] sm:$0xff] }
 0x4b2   :  { %v2197_v19 = vpop.f32.mrf.mxu0  ;;  %2462 = vmatpush.msra.mxu3 %v2409_v1  ;;  %2423 = vmatpush.msrb.mxu1 %v2376_v45  ;;  %v2386_v22 = vld [vmem:[%s3788_s12 + $0x90] sm:$0xff] }
 0x4b3   :  { %v2221_v31 = vadd.f32 %v2197_v19, %v2144_v18  ;;  %v2372_v18 = vld [vmem:[%s3788_s12 + $0x20] sm:$0xff] }
 0x4b4   :  { %2463 = vmatpush.msra.mxu3 %v2408_v13  ;;  %2424 = vmatpush.msrb.mxu1 %v2375_v14  ;;  %v2384_v19 = vld [vmem:[%s3788_s12 + $0x80] sm:$0xff] }
 0x4b6   :  { %v2140_v25 = vpop.f32.mrf.mxu2  ;;  %v2177_v27 = vpop.f32.mrf.mxu3  ;;  %2464 = vmatpush.msra.mxu3 %v2407_v20  ;;  %2425 = vmatpush.msrb.mxu1 %v2374_v21 }
 0x4b7   :  { %v2220_v32 = vadd.f32 %v2177_v27, %v2143_v26  ;;  %v2145_v2 = vadd.f32 %v2140_v25, %v2068_v35  ;;  %v2217_v40 = vpop.f32.mrf.mxu1  ;;  %v2406_v25 = vld [vmem:[%s3788_s12 + $0x130] sm:$0xff]  ;;  %v2373_v27 = vld [vmem:[%s3788_s12 + $0x28] sm:$0xff]  ;;  %v2404_v26 = vld [vmem:[%s3788_s12 + $0x120] sm:$0xff] }
 0x4b8   :  { %2465 = vmatpush.msra.mxu3 %v2406_v25  ;;  %2426 = vmatpush.msrb.mxu1 %v2373_v27  ;;  %v2401_v35 = vld [vmem:[%s3788_s12 + $0x108] sm:$0xff]  ;;  %v2482_v27 = vld [vmem:[%s3791_s13] sm:$0x1] }
 0x4b9   :  { %v2222_v43 = vadd.f32 %v2217_v40, %v2145_v2 }
 0x4ba   :  { %v2294_v47 = vpop.f32.mrf.mxu0  ;;  %2466 = vmatpush.msra.mxu3 %v2405_v29  ;;  %2427 = vmatpush.msrb.mxu1 %v2372_v18 }
 0x4bb   :  { %v2299_v48 = vadd.f32 %v2294_v47, %v2222_v43 }
 0x4bc   :  { %2467 = vmatpush.msra.mxu3 %v2404_v26  ;;  %2428 = vmatpush.msrb.mxu1 %v2371_v30 }
 0x4bd   :  { %v2308_v49 = vadd.f32 %v2304_v37, %v2299_v48 }
 0x4be   :  { %v2254_v33 = vpop.f32.mrf.mxu2  ;;  %v2274_v34 = vpop.f32.mrf.mxu3 }
 0x4bf   :  { %v2297_v36 = vadd.f32 %v2254_v33, %v2220_v32  ;;  %v2298_v4 = vadd.f32 %v2274_v34, %v2221_v31  ;;  %v2403_v31 = vld [vmem:[%s3788_s12 + $0x118] sm:$0xff]  ;;  %v2370_v32 = vld [vmem:[%s3788_s12 + $0x10] sm:$0xff]  ;;  %v2369_v34 = vld [vmem:[%s3788_s12 + $0x8] sm:$0xff] }
 0x4c0   :  { %2468 = vmatpush.msra.mxu3 %v2403_v31  ;;  %v2402_v33 = vld [vmem:[%s3788_s12 + $0x110] sm:$0xff]  ;;  %2429 = vmatpush.msrb.mxu1 %v2370_v32 }
 0x4c1   :  { %v2306_v7 = vadd.f32 %v2304_v37, %v2297_v36  ;;  %v2307_v38 = vadd.f32 %v2304_v37, %v2298_v4  ;;  %v2368_v36 = vld [vmem:[%s3788_s12] sm:$0xff] }
 0x4c2   :  { %2469 = vmatpush.msra.mxu3 %v2402_v33  ;;  %2430 = vmatpush.msrb.mxu1 %v2369_v34  ;;  %v2400_v37 = vld [vmem:[%s3788_s12 + $0x100] sm:$0xff] }
 0x4c3   :  { %v2309_v41 = vmax.f32 %v2306_v7, 0.0  ;;  %v2310_v42 = vmax.f32 %v2307_v38, 0.0 }
 0x4c4   :  { %2470 = vmatpush.msra.mxu3 %v2401_v35  ;;  %2431 = vmatpush.msrb.mxu1 %v2368_v36 }
 0x4c5   :  { %v3567_v6 = vmul.f32 %v2309_v41, %v1614_v23  ;;  %v3571_v46 = vmul.f32 %v2310_v42, %v1615_v15  ;;  %v2311_v15 = vmax.f32 %v2308_v49, 0.0  ;;  %v2351_v42 = vld [vmem:[%s3789_s10] sm:$0x7] }
 0x4c6   :  { %2471 = vmatpush.msra.mxu3 %v2400_v37  ;;  %v2353_v63 = vperm.slane %v2351_v42, 0  ;;  %v2355_v3 = vperm.slane %v2351_v42, 2 }
 0x4c7   :  { %2327 = vrot.lane.b32.xlu2 %v3567_v6, %s2805_s25  ;;  %2315 = vrot.lane.b32.xlu0 %v3567_v6, %s2808_s0  ;;  %v3587_v23 = vmul.f32 %v2311_v15, %v1616_v24  ;;  %v2396_v24 = vld [vmem:[%s3788_s12 + $0xe0] sm:$0xff]  ;;  %v2354_v15 = vperm.slane %v2351_v42, 1 }
 0x4c8   :  { %2317 = vrot.lane.b32.xlu1 %v3571_v46, %s2808_s0  ;;  %2439 = vmatpush.msrb.mxu2 %v2396_v24  ;;  %v2363_v24 = vld [vmem:[%s3790_s11 + $0x8] sm:$0xff] }
 0x4ca   :  { %2440 = vmatpush.msrb.mxu2 %v2395_v52 }
 0x4cc   :  { %2441 = vmatpush.msrb.mxu2 %v2394_v55 }
 0x4ce   :  { %2442 = vmatpush.msrb.mxu2 %v2393_v60 }
 0x4cf   :  { %2338 = vrot.lane.b32.xlu2 %v3571_v46, %s2806_s26  ;;  %2329 = vrot.lane.b32.xlu0 %v3571_v46, %s2805_s25 }
 0x4d0   :  { %2336 = vrot.lane.b32.xlu1 %v3567_v6, %s2806_s26  ;;  %2443 = vmatpush.msrb.mxu2 %v2392_v62 }
 0x4d2   :  { %2444 = vmatpush.msrb.mxu2 %v2391_v5 }
 0x4d4   :  { %2445 = vmatpush.msrb.mxu2 %v2390_v10 }
 0x4d6   :  { %2446 = vmatpush.msrb.mxu2 %v2389_v44 }
 0x4d7   :  { %2340 = vrot.lane.b32.xlu2 %v3587_v23, %s2806_s26  ;;  %2319 = vrot.lane.b32.xlu0 %v3587_v23, %s2808_s0 }
 0x4d8   :  { %2331 = vrot.lane.b32.xlu1 %v3587_v23, %s2805_s25  ;;  %2447 = vmatpush.msrb.mxu2 %v2388_v12 }
 0x4da   :  { %2448 = vmatpush.msrb.mxu2 %v2387_v16 }
 0x4dc   :  { %2449 = vmatpush.msrb.mxu2 %v2386_v22 }
 0x4de   :  { %2450 = vmatpush.msrb.mxu2 %v2385_v28 }
 0x4e0   :  { %2451 = vmatpush.msrb.mxu2 %v2384_v19 }
 0x521   :  { %v2328_v4 = vpop.permute.xlu2 %2327 }
 0x529   :  { %v2339_v38 = vpop.permute.xlu2 %2338 }
 0x531   :  { %v2341_v51 = vpop.permute.xlu2 %2340 }
 0x532   :  { %v2342_v52 = vsel %vm67_vm2, %v2339_v38, %v2341_v51 }
 0x539   :  { %v2316_v2 = vpop.permute.xlu0 %2315 }
 0x53a   :  { %v2318_v7 = vpop.permute.xlu1 %2317 }
 0x53b   :  { %v2322_v40 = vsel %vm322_vm4, %v2316_v2, %v2318_v7 }
 0x53c   :  { %v2325_v49 = vmax.f32 %v3571_v46, %v2322_v40 }
 0x541   :  { %v2330_v41 = vpop.permute.xlu0 %2329 }
 0x542   :  { %v2334_v43 = vsel %vm87_vm1, %v2328_v4, %v2330_v41  ;;  %v2337_v47 = vpop.permute.xlu1 %2336 }
 0x543   :  { %v2343_v48 = vsel %vm67_vm2, %v2337_v47, %v2339_v38  ;;  %v2344_v54 = vsel %vm67_vm2, %v2341_v51, %v2337_v47 }
 0x544   :  { %v2346_v50 = vmax.f32 %v2334_v43, %v2343_v48 }
 0x546   :  { %v2349_v59 = vmax.f32 %v2325_v49, %v2346_v50 }
 0x548   :  { %v2360_v0 = vmul.f32 %v2354_v15, %v2349_v59 }
 0x549   :  { %v2320_v53 = vpop.permute.xlu0 %2319 }
 0x54a   :  { %v2321_v55 = vsel %vm322_vm4, %v2318_v7, %v2320_v53  ;;  %v2323_v46 = vsel %vm322_vm4, %v2320_v53, %v2316_v2  ;;  %v2332_v56 = vpop.permute.xlu1 %2331  ;;  %v2366_v57 = vmul.f32 %v2363_v24, %v2360_v0 }
 0x54b   :  { %v2324_v58 = vmax.f32 %v3567_v6, %v2323_v46  ;;  %v2326_v60 = vmax.f32 %v3587_v23, %v2321_v55  ;;  %v2333_v61 = vsel %vm87_vm1, %v2330_v41, %v2332_v56  ;;  %v2335_v62 = vsel %vm87_vm1, %v2332_v56, %v2328_v4  ;;  %v2364_v6 = vld [vmem:[%s3790_s11 + $0x10] sm:$0xff] }
 0x54c   :  { %v2345_v5 = vmax.f32 %v2335_v62, %v2344_v54  ;;  %v2347_v8 = vmax.f32 %v2333_v61, %v2342_v52  ;;  %2452 = vmatmul.f32.vlgmr.msrb.gmra.mxu2 %v2366_v57 }
 0x54e   :  { %v2348_v9 = vmax.f32 %v2324_v58, %v2345_v5  ;;  %v2350_v10 = vmax.f32 %v2326_v60, %v2347_v8 }
 0x550   :  { %v2359_v23 = vmul.f32 %v2353_v63, %v2348_v9  ;;  %v2361_v39 = vmul.f32 %v2355_v3, %v2350_v10 }
 0x552   :  { %v2365_v44 = vmul.f32 %v2362_v11, %v2359_v23  ;;  %v2367_v17 = vmul.f32 %v2364_v6, %v2361_v39 }
 0x554   :  { %2432 = vmatmul.f32.vlgmr.msrb.gmra.mxu1 %v2365_v44  ;;  %2472 = vmatmul.f32.vlgmr.msra.gmra.mxu3 %v2367_v17 }
 0x5cf   :  { %v2453_v45 = vpop.f32.mrf.mxu2 }
 0x5d1   :  { %v2433_v1 = vpop.f32.mrf.mxu1 }
 0x5d2   :  { %v2454_v12 = vadd.f32 %v2453_v45, %v2433_v1 }
 0x5d7   :  { %v2473_v13 = vpop.f32.mrf.mxu3 }
 0x5d8   :  { %v2474_v14 = vadd.f32 %v2473_v13, %v2454_v12 }
 0x5da   :  { %v2476_v16 = vrot.slane %v2474_v14, 4 }
 0x5dc   :  { %v2477_v20 = vadd.f32 %v2476_v16, %v2474_v14 }
 0x5de   :  { %v2478_v21 = vrot.slane %v2477_v20, 2 }
 0x5e0   :  { %v2479_v22 = vadd.f32 %v2478_v21, %v2477_v20 }
 0x5e2   :  { %v2480_v25 = vrot.slane %v2479_v22, 1 }
 0x5e4   :  { %v2481_v28 = vadd.f32 %v2480_v25, %v2479_v22 }
 0x5e6   :  { %v2483_v29 = vadd.f32 %v2482_v27, %v2481_v28 }
 0x5e8   :  { %2484 = vst [vmem:[%s3792_s14] sm:$0x1] %v2483_v29 }

</bundles_post_ra>
